<compile_context>
chip_gen: v7x
topology: tpu7x:2x2x1
jax: 0.10.0
libtpu: 0.0.40
codegen_flags: <defaults>
</compile_context>

<pallas_src>
from functools import partial

import jax
import jax.numpy as jnp
from jax import lax
from jax.experimental import pallas as pl
from jax.experimental.pallas import tpu as pltpu


def _hier_emb_kernel(ids_hbm,               # HBM  (B*n_tiles, TS*G) int32 (pl.ANY)
                     bias_ref,              # VMEM (TS, H) pos + token-type rows (f32)
                     gamma_ref, beta_ref,   # VMEM (1, H)  LayerNorm params (f32)
                     word_emb_hbm,          # HBM  (V, H)  embedding table (pl.ANY)
                     out_ref,               # VMEM (1, TS, H) f32
                     ids_smem,              # SMEM (TS*G,) int32 scratch
                     rows_buf,              # VMEM (2, W*G, H) word dtype double buffer
                     sems,                  # DMA semaphores (3,): [slot0, slot1, ids]
                     *, tile_s, chunk_w, n_hier, eps):
    n_chunks = tile_s // chunk_w

    b = pl.program_id(0)
    t = pl.program_id(1)
    tile_idx = b * pl.num_programs(1) + t

    # Stage this tile's gene ids (TS*G int32, a few KiB) into SMEM; they drive
    # the data-dependent row-gather DMAs below.
    ids_cp = pltpu.make_async_copy(ids_hbm.at[tile_idx], ids_smem, sems.at[2])
    ids_cp.start()
    ids_cp.wait()

    def fetch(chunk, slot):
        # Issue chunk_w * n_hier row-gather DMAs into rows_buf[slot].
        base = chunk * chunk_w
        for w in range(chunk_w):                       # static small loops
            for g in range(n_hier):
                row = ids_smem[(base + w) * n_hier + g]
                pltpu.make_async_copy(word_emb_hbm.at[row],
                                      rows_buf.at[slot, w * n_hier + g],
                                      sems.at[slot]).start()

    def wait(slot):
        # All chunk_w*n_hier row copies of this chunk signal sems[slot]; a single
        # wait sized for the whole slot (= sum of the per-row byte counts)
        # collects them in one go.
        pltpu.make_async_copy(rows_buf.at[slot], rows_buf.at[slot],
                              sems.at[slot]).wait()

    # Prime slot 0 with the first chunk's rows.
    fetch(0, 0)

    gamma = gamma_ref[...]          # (1, H)
    beta = beta_ref[...]            # (1, H)

    for c in range(n_chunks):       # static trip count
        slot = c & 1
        # Prefetch the NEXT chunk before waiting on the current one, so its
        # HBM round-trips overlap the wait + compute below.
        if c + 1 < n_chunks:
            fetch(c + 1, 1 - slot)
        wait(slot)

        rows = rows_buf[slot].astype(jnp.float32)              # (W*G, H)
        rows = rows.reshape(chunk_w, n_hier, rows.shape[-1])   # (W, G, H)
        emb = jnp.sum(rows, axis=1)                            # (W, H)
        emb = emb + bias_ref[pl.ds(c * chunk_w, chunk_w), :]

        # Fused LayerNorm epilogue: (x - mean) * (rsqrt(var+eps) * gamma) + beta
        mean = jnp.mean(emb, axis=-1, keepdims=True)
        var = jnp.mean(jnp.square(emb - mean), axis=-1, keepdims=True)
        scale = lax.rsqrt(var + eps) * gamma
        out_ref[0, pl.ds(c * chunk_w, chunk_w), :] = (emb - mean) * scale + beta
    # Dropout is identity in eval mode.


def _pick_seq_tile(S):
    for c in (512, 256, 128, 64, 32, 16, 8):
        if S % c == 0:
            return c
    return S        # odd / tiny S: whole-sequence block (block == full dim is legal)


def _pick_chunk(ts):
    # W tokens per gather chunk -> W*G row DMAs in flight while computing.
    for c in (16, 8):
        if ts % c == 0:
            return c
    return ts


def roberta_hierarchical_embeddings_v2(gene_ids, word_emb, pos_emb,
                                       tok_type_emb, ln_gamma, ln_beta,
                                       pad_token_id, eps=1e-12):
    B, S, G = gene_ids.shape
    V, H = word_emb.shape
    max_pos = pos_emb.shape[0]
    if S + pad_token_id + 1 > max_pos:
        # PyTorch would index out of range here; fail loudly instead of clamping.
        raise ValueError("sequence length + pad_token_id + 1 exceeds "
                         "max_position_embeddings")

    TS = _pick_seq_tile(S)
    W = _pick_chunk(TS)
    n_tiles = S // TS

    # Host-side glue (static index math, no data dependence):
    #   position_ids = arange(pad+1, S+pad+1)  -> contiguous slice of the table
    #   token_type_ids == 0 everywhere         -> fold row 0 into the same bias
    bias = (pos_emb[pad_token_id + 1: S + pad_token_id + 1].astype(jnp.float32)
            + tok_type_emb[0].astype(jnp.float32)[None, :])            # (S, H)
    gamma2 = ln_gamma.reshape(1, H).astype(jnp.float32)
    beta2 = ln_beta.reshape(1, H).astype(jnp.float32)

    # One row of TS*G gene ids per (batch, S-tile) grid step; stays in HBM and
    # is DMA'd into a small SMEM scratch inside the kernel.
    gene_tiled = gene_ids.astype(jnp.int32).reshape(B * n_tiles, TS * G)

    kernel = partial(_hier_emb_kernel, tile_s=TS, chunk_w=W, n_hier=G, eps=eps)
    return pl.pallas_call(
        kernel,
        out_shape=jax.ShapeDtypeStruct((B, S, H), jnp.float32),
        grid_spec=pltpu.PrefetchScalarGridSpec(
            num_scalar_prefetch=0,
            grid=(B, n_tiles),
            in_specs=[
                pl.BlockSpec(memory_space=pl.ANY),                 # gene ids (HBM)
                pl.BlockSpec((TS, H), lambda b, t: (t, 0)),        # pos+tok bias
                pl.BlockSpec((1, H), lambda b, t: (0, 0)),         # LN gamma
                pl.BlockSpec((1, H), lambda b, t: (0, 0)),         # LN beta
                pl.BlockSpec(memory_space=pl.ANY),                 # word emb (HBM)
            ],
            out_specs=pl.BlockSpec((1, TS, H), lambda b, t: (b, t, 0)),
            scratch_shapes=[
                pltpu.SMEM((TS * G,), jnp.int32),                  # id staging
                pltpu.VMEM((2, W * G, H), word_emb.dtype),         # row double buffer
                pltpu.SemaphoreType.DMA((3,)),                     # slot0, slot1, ids
            ],
        ),
        compiler_params=pltpu.CompilerParams(
            dimension_semantics=("parallel", "parallel")),
    )(gene_tiled, bias, gamma2, beta2, word_emb)


def _reference(gene_ids, word_emb, pos_emb, tok_type_emb, gamma, beta,
               pad_token_id, eps):
    hier = word_emb[gene_ids]                   # (B, S, G, H)
    inputs_embeds = hier.sum(axis=2)            # (B, S, H)
    B, S, H = inputs_embeds.shape
    pos_ids = jnp.arange(pad_token_id + 1, S + pad_token_id + 1)
    emb = (inputs_embeds
           + tok_type_emb[0][None, None, :]
           + pos_emb[pos_ids][None, :, :])
    mean = emb.mean(-1, keepdims=True)
    var = ((emb - mean) ** 2).mean(-1, keepdims=True)
    return (emb - mean) / jnp.sqrt(var + eps) * gamma + beta


if __name__ == "__main__":
    # Small synthetic config (H kept a multiple of 128 for lane-dense stores).
    B, S, G, H = 2, 8, 4, 128
    vocab_size = 64
    max_position_embeddings = 40
    type_vocab_size = 2
    pad_token_id = 1
    layer_norm_eps = 1e-12

    key = jax.random.PRNGKey(0)
    k_w, k_p, k_t, k_g, k_b, k_ids = jax.random.split(key, 6)

    word_emb = 0.02 * jax.random.normal(k_w, (vocab_size, H), jnp.float32)
    word_emb = word_emb.at[pad_token_id].set(0.0)          # padding_idx row = 0
    pos_emb = 0.02 * jax.random.normal(k_p, (max_position_embeddings, H),
                                       jnp.float32)
    pos_emb = pos_emb.at[pad_token_id].set(0.0)            # padding_idx row = 0
    tok_type_emb = 0.02 * jax.random.normal(k_t, (type_vocab_size, H),
                                            jnp.float32)
    ln_gamma = 1.0 + 0.1 * jax.random.normal(k_g, (H,), jnp.float32)
    ln_beta = 0.1 * jax.random.normal(k_b, (H,), jnp.float32)

    gene_ids = jax.random.randint(k_ids, (B, S, G), 0, vocab_size, jnp.int32)

    out = roberta_hierarchical_embeddings_v2(
        gene_ids, word_emb, pos_emb, tok_type_emb, ln_gamma, ln_beta,
        pad_token_id, eps=layer_norm_eps)
    out = jax.block_until_ready(out)

    ref = _reference(gene_ids, word_emb, pos_emb, tok_type_emb,
                     ln_gamma, ln_beta, pad_token_id, layer_norm_eps)
    assert out.shape == (B, S, H)
    assert jnp.allclose(out, ref, rtol=1e-4, atol=1e-4), "mismatch vs reference"

    print("KERNEL_OK")
</pallas_src>

<mosaic_0001>
module attributes {stable_mosaic.version = 11 : i64} {
  func.func @_hier_emb_kernel(%arg0: i32, %arg1: i32, %arg2: memref<2x32xi32, #tpu.memory_space<any>>, %arg3: memref<8x128xf32, #tpu.memory_space<vmem>>, %arg4: memref<1x128xf32, #tpu.memory_space<vmem>>, %arg5: memref<1x128xf32, #tpu.memory_space<vmem>>, %arg6: memref<64x128xf32, #tpu.memory_space<any>>, %arg7: memref<1x8x128xf32, #tpu.memory_space<vmem>>, %arg8: memref<32xi32, #tpu.memory_space<smem>>, %arg9: memref<2x32x128xf32, #tpu.memory_space<vmem>>, %arg10: memref<3x!tpu.dma_semaphore, #tpu.memory_space<semaphore_mem>>) attributes {dimension_semantics = [#tpu.dimension_semantics<parallel>, #tpu.dimension_semantics<parallel>], iteration_bounds = array<i64: 2, 1>, scalar_prefetch = 0 : i64, scratch_operands = 3 : i64, tpu.core_type = #tpu.core_type<tc>, window_params = [{}, {transform_indices = @transform_1, window_bounds = array<i64: 8, 128>}, {pipeline_mode = #tpu.pipeline_mode<synchronous>, transform_indices = @transform_2, window_bounds = array<i64: 1, 128>}, {pipeline_mode = #tpu.pipeline_mode<synchronous>, transform_indices = @transform_3, window_bounds = array<i64: 1, 128>}, {}, {transform_indices = @transform_5, window_bounds = array<i64: 1, 8, 128>}]} {
    %c1_i32 = arith.constant 1 : i32
    %0 = arith.muli %arg0, %c1_i32 : i32
    %1 = arith.addi %0, %arg1 : i32
    %c2_i32 = arith.constant 2 : i32
    %c0_i32 = arith.constant 0 : i32
    %2 = tpu.memref_slice %arg2[%1, %c0_i32] : memref<2x32xi32, #tpu.memory_space<any>> -> memref<1x32xi32, #tpu.memory_space<any>>
    %3 = tpu.memref_squeeze %2 : memref<1x32xi32, #tpu.memory_space<any>> -> memref<32xi32, #tpu.memory_space<any>>
    %4 = tpu.memref_slice %arg10[%c2_i32] : memref<3x!tpu.dma_semaphore, #tpu.memory_space<semaphore_mem>> -> memref<1x!tpu.dma_semaphore, #tpu.memory_space<semaphore_mem>>
    %5 = tpu.memref_squeeze %4 : memref<1x!tpu.dma_semaphore, #tpu.memory_space<semaphore_mem>> -> memref<!tpu.dma_semaphore, #tpu.memory_space<semaphore_mem>>
    tpu.enqueue_dma source(%3 : memref<32xi32, #tpu.memory_space<any>>) target(%arg8 : memref<32xi32, #tpu.memory_space<smem>>) target_semaphore(%5 : memref<!tpu.dma_semaphore, #tpu.memory_space<semaphore_mem>>)
    %c2_i32_0 = arith.constant 2 : i32
    %c0_i32_1 = arith.constant 0 : i32
    %6 = tpu.memref_slice %arg2[%1, %c0_i32_1] : memref<2x32xi32, #tpu.memory_space<any>> -> memref<1x32xi32, #tpu.memory_space<any>>
    %7 = tpu.memref_squeeze %6 : memref<1x32xi32, #tpu.memory_space<any>> -> memref<32xi32, #tpu.memory_space<any>>
    %8 = tpu.memref_slice %arg10[%c2_i32_0] : memref<3x!tpu.dma_semaphore, #tpu.memory_space<semaphore_mem>> -> memref<1x!tpu.dma_semaphore, #tpu.memory_space<semaphore_mem>>
    %9 = tpu.memref_squeeze %8 : memref<1x!tpu.dma_semaphore, #tpu.memory_space<semaphore_mem>> -> memref<!tpu.dma_semaphore, #tpu.memory_space<semaphore_mem>>
    tpu.wait_dma2 semaphore(%9 : memref<!tpu.dma_semaphore, #tpu.memory_space<semaphore_mem>>) src(%7 : memref<32xi32, #tpu.memory_space<any>>) dst(%arg8 : memref<32xi32, #tpu.memory_space<smem>>)
    %c0 = arith.constant 0 : index
    %10 = memref.load %arg8[%c0] : memref<32xi32, #tpu.memory_space<smem>>
    %c0_i32_2 = arith.constant 0 : i32
    %c0_i32_3 = arith.constant 0 : i32
    %c0_i32_4 = arith.constant 0 : i32
    %c0_i32_5 = arith.constant 0 : i32
    %11 = tpu.memref_slice %arg6[%10, %c0_i32_5] : memref<64x128xf32, #tpu.memory_space<any>> -> memref<1x128xf32, #tpu.memory_space<any>>
    %12 = tpu.memref_squeeze %11 : memref<1x128xf32, #tpu.memory_space<any>> -> memref<128xf32, #tpu.memory_space<any>>
    %c0_i32_6 = arith.constant 0 : i32
    %13 = tpu.memref_slice %arg9[%c0_i32_2, %c0_i32_3, %c0_i32_6] : memref<2x32x128xf32, #tpu.memory_space<vmem>> -> memref<1x1x128xf32, #tpu.memory_space<vmem>>
    %14 = tpu.memref_squeeze %13 : memref<1x1x128xf32, #tpu.memory_space<vmem>> -> memref<128xf32, #tpu.memory_space<vmem>>
    %15 = tpu.memref_slice %arg10[%c0_i32_4] : memref<3x!tpu.dma_semaphore, #tpu.memory_space<semaphore_mem>> -> memref<1x!tpu.dma_semaphore, #tpu.memory_space<semaphore_mem>>
    %16 = tpu.memref_squeeze %15 : memref<1x!tpu.dma_semaphore, #tpu.memory_space<semaphore_mem>> -> memref<!tpu.dma_semaphore, #tpu.memory_space<semaphore_mem>>
    tpu.enqueue_dma source(%12 : memref<128xf32, #tpu.memory_space<any>>) target(%14 : memref<128xf32, #tpu.memory_space<vmem>>) target_semaphore(%16 : memref<!tpu.dma_semaphore, #tpu.memory_space<semaphore_mem>>)
    %c1 = arith.constant 1 : index
    %17 = memref.load %arg8[%c1] : memref<32xi32, #tpu.memory_space<smem>>
    %c0_i32_7 = arith.constant 0 : i32
    %c1_i32_8 = arith.constant 1 : i32
    %c0_i32_9 = arith.constant 0 : i32
    %c0_i32_10 = arith.constant 0 : i32
    %18 = tpu.memref_slice %arg6[%17, %c0_i32_10] : memref<64x128xf32, #tpu.memory_space<any>> -> memref<1x128xf32, #tpu.memory_space<any>>
    %19 = tpu.memref_squeeze %18 : memref<1x128xf32, #tpu.memory_space<any>> -> memref<128xf32, #tpu.memory_space<any>>
    %c0_i32_11 = arith.constant 0 : i32
    %20 = tpu.memref_slice %arg9[%c0_i32_7, %c1_i32_8, %c0_i32_11] : memref<2x32x128xf32, #tpu.memory_space<vmem>> -> memref<1x1x128xf32, #tpu.memory_space<vmem>>
    %21 = tpu.memref_squeeze %20 : memref<1x1x128xf32, #tpu.memory_space<vmem>> -> memref<128xf32, #tpu.memory_space<vmem>>
    %22 = tpu.memref_slice %arg10[%c0_i32_9] : memref<3x!tpu.dma_semaphore, #tpu.memory_space<semaphore_mem>> -> memref<1x!tpu.dma_semaphore, #tpu.memory_space<semaphore_mem>>
    %23 = tpu.memref_squeeze %22 : memref<1x!tpu.dma_semaphore, #tpu.memory_space<semaphore_mem>> -> memref<!tpu.dma_semaphore, #tpu.memory_space<semaphore_mem>>
    tpu.enqueue_dma source(%19 : memref<128xf32, #tpu.memory_space<any>>) target(%21 : memref<128xf32, #tpu.memory_space<vmem>>) target_semaphore(%23 : memref<!tpu.dma_semaphore, #tpu.memory_space<semaphore_mem>>)
    %c2 = arith.constant 2 : index
    %24 = memref.load %arg8[%c2] : memref<32xi32, #tpu.memory_space<smem>>
    %c0_i32_12 = arith.constant 0 : i32
    %c2_i32_13 = arith.constant 2 : i32
    %c0_i32_14 = arith.constant 0 : i32
    %c0_i32_15 = arith.constant 0 : i32
    %25 = tpu.memref_slice %arg6[%24, %c0_i32_15] : memref<64x128xf32, #tpu.memory_space<any>> -> memref<1x128xf32, #tpu.memory_space<any>>
    %26 = tpu.memref_squeeze %25 : memref<1x128xf32, #tpu.memory_space<any>> -> memref<128xf32, #tpu.memory_space<any>>
    %c0_i32_16 = arith.constant 0 : i32
    %27 = tpu.memref_slice %arg9[%c0_i32_12, %c2_i32_13, %c0_i32_16] : memref<2x32x128xf32, #tpu.memory_space<vmem>> -> memref<1x1x128xf32, #tpu.memory_space<vmem>>
    %28 = tpu.memref_squeeze %27 : memref<1x1x128xf32, #tpu.memory_space<vmem>> -> memref<128xf32, #tpu.memory_space<vmem>>
    %29 = tpu.memref_slice %arg10[%c0_i32_14] : memref<3x!tpu.dma_semaphore, #tpu.memory_space<semaphore_mem>> -> memref<1x!tpu.dma_semaphore, #tpu.memory_space<semaphore_mem>>
    %30 = tpu.memref_squeeze %29 : memref<1x!tpu.dma_semaphore, #tpu.memory_space<semaphore_mem>> -> memref<!tpu.dma_semaphore, #tpu.memory_space<semaphore_mem>>
    tpu.enqueue_dma source(%26 : memref<128xf32, #tpu.memory_space<any>>) target(%28 : memref<128xf32, #tpu.memory_space<vmem>>) target_semaphore(%30 : memref<!tpu.dma_semaphore, #tpu.memory_space<semaphore_mem>>)
    %c3 = arith.constant 3 : index
    %31 = memref.load %arg8[%c3] : memref<32xi32, #tpu.memory_space<smem>>
    %c0_i32_17 = arith.constant 0 : i32
    %c3_i32 = arith.constant 3 : i32
    %c0_i32_18 = arith.constant 0 : i32
    %c0_i32_19 = arith.constant 0 : i32
    %32 = tpu.memref_slice %arg6[%31, %c0_i32_19] : memref<64x128xf32, #tpu.memory_space<any>> -> memref<1x128xf32, #tpu.memory_space<any>>
    %33 = tpu.memref_squeeze %32 : memref<1x128xf32, #tpu.memory_space<any>> -> memref<128xf32, #tpu.memory_space<any>>
    %c0_i32_20 = arith.constant 0 : i32
    %34 = tpu.memref_slice %arg9[%c0_i32_17, %c3_i32, %c0_i32_20] : memref<2x32x128xf32, #tpu.memory_space<vmem>> -> memref<1x1x128xf32, #tpu.memory_space<vmem>>
    %35 = tpu.memref_squeeze %34 : memref<1x1x128xf32, #tpu.memory_space<vmem>> -> memref<128xf32, #tpu.memory_space<vmem>>
    %36 = tpu.memref_slice %arg10[%c0_i32_18] : memref<3x!tpu.dma_semaphore, #tpu.memory_space<semaphore_mem>> -> memref<1x!tpu.dma_semaphore, #tpu.memory_space<semaphore_mem>>
    %37 = tpu.memref_squeeze %36 : memref<1x!tpu.dma_semaphore, #tpu.memory_space<semaphore_mem>> -> memref<!tpu.dma_semaphore, #tpu.memory_space<semaphore_mem>>
    tpu.enqueue_dma source(%33 : memref<128xf32, #tpu.memory_space<any>>) target(%35 : memref<128xf32, #tpu.memory_space<vmem>>) target_semaphore(%37 : memref<!tpu.dma_semaphore, #tpu.memory_space<semaphore_mem>>)
    %c4 = arith.constant 4 : index
    %38 = memref.load %arg8[%c4] : memref<32xi32, #tpu.memory_space<smem>>
    %c0_i32_21 = arith.constant 0 : i32
    %c4_i32 = arith.constant 4 : i32
    %c0_i32_22 = arith.constant 0 : i32
    %c0_i32_23 = arith.constant 0 : i32
    %39 = tpu.memref_slice %arg6[%38, %c0_i32_23] : memref<64x128xf32, #tpu.memory_space<any>> -> memref<1x128xf32, #tpu.memory_space<any>>
    %40 = tpu.memref_squeeze %39 : memref<1x128xf32, #tpu.memory_space<any>> -> memref<128xf32, #tpu.memory_space<any>>
    %c0_i32_24 = arith.constant 0 : i32
    %41 = tpu.memref_slice %arg9[%c0_i32_21, %c4_i32, %c0_i32_24] : memref<2x32x128xf32, #tpu.memory_space<vmem>> -> memref<1x1x128xf32, #tpu.memory_space<vmem>>
    %42 = tpu.memref_squeeze %41 : memref<1x1x128xf32, #tpu.memory_space<vmem>> -> memref<128xf32, #tpu.memory_space<vmem>>
    %43 = tpu.memref_slice %arg10[%c0_i32_22] : memref<3x!tpu.dma_semaphore, #tpu.memory_space<semaphore_mem>> -> memref<1x!tpu.dma_semaphore, #tpu.memory_space<semaphore_mem>>
    %44 = tpu.memref_squeeze %43 : memref<1x!tpu.dma_semaphore, #tpu.memory_space<semaphore_mem>> -> memref<!tpu.dma_semaphore, #tpu.memory_space<semaphore_mem>>
    tpu.enqueue_dma source(%40 : memref<128xf32, #tpu.memory_space<any>>) target(%42 : memref<128xf32, #tpu.memory_space<vmem>>) target_semaphore(%44 : memref<!tpu.dma_semaphore, #tpu.memory_space<semaphore_mem>>)
    %c5 = arith.constant 5 : index
    %45 = memref.load %arg8[%c5] : memref<32xi32, #tpu.memory_space<smem>>
    %c0_i32_25 = arith.constant 0 : i32
    %c5_i32 = arith.constant 5 : i32
    %c0_i32_26 = arith.constant 0 : i32
    %c0_i32_27 = arith.constant 0 : i32
    %46 = tpu.memref_slice %arg6[%45, %c0_i32_27] : memref<64x128xf32, #tpu.memory_space<any>> -> memref<1x128xf32, #tpu.memory_space<any>>
    %47 = tpu.memref_squeeze %46 : memref<1x128xf32, #tpu.memory_space<any>> -> memref<128xf32, #tpu.memory_space<any>>
    %c0_i32_28 = arith.constant 0 : i32
    %48 = tpu.memref_slice %arg9[%c0_i32_25, %c5_i32, %c0_i32_28] : memref<2x32x128xf32, #tpu.memory_space<vmem>> -> memref<1x1x128xf32, #tpu.memory_space<vmem>>
    %49 = tpu.memref_squeeze %48 : memref<1x1x128xf32, #tpu.memory_space<vmem>> -> memref<128xf32, #tpu.memory_space<vmem>>
    %50 = tpu.memref_slice %arg10[%c0_i32_26] : memref<3x!tpu.dma_semaphore, #tpu.memory_space<semaphore_mem>> -> memref<1x!tpu.dma_semaphore, #tpu.memory_space<semaphore_mem>>
    %51 = tpu.memref_squeeze %50 : memref<1x!tpu.dma_semaphore, #tpu.memory_space<semaphore_mem>> -> memref<!tpu.dma_semaphore, #tpu.memory_space<semaphore_mem>>
    tpu.enqueue_dma source(%47 : memref<128xf32, #tpu.memory_space<any>>) target(%49 : memref<128xf32, #tpu.memory_space<vmem>>) target_semaphore(%51 : memref<!tpu.dma_semaphore, #tpu.memory_space<semaphore_mem>>)
    %c6 = arith.constant 6 : index
    %52 = memref.load %arg8[%c6] : memref<32xi32, #tpu.memory_space<smem>>
    %c0_i32_29 = arith.constant 0 : i32
    %c6_i32 = arith.constant 6 : i32
    %c0_i32_30 = arith.constant 0 : i32
    %c0_i32_31 = arith.constant 0 : i32
    %53 = tpu.memref_slice %arg6[%52, %c0_i32_31] : memref<64x128xf32, #tpu.memory_space<any>> -> memref<1x128xf32, #tpu.memory_space<any>>
    %54 = tpu.memref_squeeze %53 : memref<1x128xf32, #tpu.memory_space<any>> -> memref<128xf32, #tpu.memory_space<any>>
    %c0_i32_32 = arith.constant 0 : i32
    %55 = tpu.memref_slice %arg9[%c0_i32_29, %c6_i32, %c0_i32_32] : memref<2x32x128xf32, #tpu.memory_space<vmem>> -> memref<1x1x128xf32, #tpu.memory_space<vmem>>
    %56 = tpu.memref_squeeze %55 : memref<1x1x128xf32, #tpu.memory_space<vmem>> -> memref<128xf32, #tpu.memory_space<vmem>>
    %57 = tpu.memref_slice %arg10[%c0_i32_30] : memref<3x!tpu.dma_semaphore, #tpu.memory_space<semaphore_mem>> -> memref<1x!tpu.dma_semaphore, #tpu.memory_space<semaphore_mem>>
    %58 = tpu.memref_squeeze %57 : memref<1x!tpu.dma_semaphore, #tpu.memory_space<semaphore_mem>> -> memref<!tpu.dma_semaphore, #tpu.memory_space<semaphore_mem>>
    tpu.enqueue_dma source(%54 : memref<128xf32, #tpu.memory_space<any>>) target(%56 : memref<128xf32, #tpu.memory_space<vmem>>) target_semaphore(%58 : memref<!tpu.dma_semaphore, #tpu.memory_space<semaphore_mem>>)
    %c7 = arith.constant 7 : index
    %59 = memref.load %arg8[%c7] : memref<32xi32, #tpu.memory_space<smem>>
    %c0_i32_33 = arith.constant 0 : i32
    %c7_i32 = arith.constant 7 : i32
    %c0_i32_34 = arith.constant 0 : i32
    %c0_i32_35 = arith.constant 0 : i32
    %60 = tpu.memref_slice %arg6[%59, %c0_i32_35] : memref<64x128xf32, #tpu.memory_space<any>> -> memref<1x128xf32, #tpu.memory_space<any>>
    %61 = tpu.memref_squeeze %60 : memref<1x128xf32, #tpu.memory_space<any>> -> memref<128xf32, #tpu.memory_space<any>>
    %c0_i32_36 = arith.constant 0 : i32
    %62 = tpu.memref_slice %arg9[%c0_i32_33, %c7_i32, %c0_i32_36] : memref<2x32x128xf32, #tpu.memory_space<vmem>> -> memref<1x1x128xf32, #tpu.memory_space<vmem>>
    %63 = tpu.memref_squeeze %62 : memref<1x1x128xf32, #tpu.memory_space<vmem>> -> memref<128xf32, #tpu.memory_space<vmem>>
    %64 = tpu.memref_slice %arg10[%c0_i32_34] : memref<3x!tpu.dma_semaphore, #tpu.memory_space<semaphore_mem>> -> memref<1x!tpu.dma_semaphore, #tpu.memory_space<semaphore_mem>>
    %65 = tpu.memref_squeeze %64 : memref<1x!tpu.dma_semaphore, #tpu.memory_space<semaphore_mem>> -> memref<!tpu.dma_semaphore, #tpu.memory_space<semaphore_mem>>
    tpu.enqueue_dma source(%61 : memref<128xf32, #tpu.memory_space<any>>) target(%63 : memref<128xf32, #tpu.memory_space<vmem>>) target_semaphore(%65 : memref<!tpu.dma_semaphore, #tpu.memory_space<semaphore_mem>>)
    %c8 = arith.constant 8 : index
    %66 = memref.load %arg8[%c8] : memref<32xi32, #tpu.memory_space<smem>>
    %c0_i32_37 = arith.constant 0 : i32
    %c8_i32 = arith.constant 8 : i32
    %c0_i32_38 = arith.constant 0 : i32
    %c0_i32_39 = arith.constant 0 : i32
    %67 = tpu.memref_slice %arg6[%66, %c0_i32_39] : memref<64x128xf32, #tpu.memory_space<any>> -> memref<1x128xf32, #tpu.memory_space<any>>
    %68 = tpu.memref_squeeze %67 : memref<1x128xf32, #tpu.memory_space<any>> -> memref<128xf32, #tpu.memory_space<any>>
    %c0_i32_40 = arith.constant 0 : i32
    %69 = tpu.memref_slice %arg9[%c0_i32_37, %c8_i32, %c0_i32_40] : memref<2x32x128xf32, #tpu.memory_space<vmem>> -> memref<1x1x128xf32, #tpu.memory_space<vmem>>
    %70 = tpu.memref_squeeze %69 : memref<1x1x128xf32, #tpu.memory_space<vmem>> -> memref<128xf32, #tpu.memory_space<vmem>>
    %71 = tpu.memref_slice %arg10[%c0_i32_38] : memref<3x!tpu.dma_semaphore, #tpu.memory_space<semaphore_mem>> -> memref<1x!tpu.dma_semaphore, #tpu.memory_space<semaphore_mem>>
    %72 = tpu.memref_squeeze %71 : memref<1x!tpu.dma_semaphore, #tpu.memory_space<semaphore_mem>> -> memref<!tpu.dma_semaphore, #tpu.memory_space<semaphore_mem>>
    tpu.enqueue_dma source(%68 : memref<128xf32, #tpu.memory_space<any>>) target(%70 : memref<128xf32, #tpu.memory_space<vmem>>) target_semaphore(%72 : memref<!tpu.dma_semaphore, #tpu.memory_space<semaphore_mem>>)
    %c9 = arith.constant 9 : index
    %73 = memref.load %arg8[%c9] : memref<32xi32, #tpu.memory_space<smem>>
    %c0_i32_41 = arith.constant 0 : i32
    %c9_i32 = arith.constant 9 : i32
    %c0_i32_42 = arith.constant 0 : i32
    %c0_i32_43 = arith.constant 0 : i32
    %74 = tpu.memref_slice %arg6[%73, %c0_i32_43] : memref<64x128xf32, #tpu.memory_space<any>> -> memref<1x128xf32, #tpu.memory_space<any>>
    %75 = tpu.memref_squeeze %74 : memref<1x128xf32, #tpu.memory_space<any>> -> memref<128xf32, #tpu.memory_space<any>>
    %c0_i32_44 = arith.constant 0 : i32
    %76 = tpu.memref_slice %arg9[%c0_i32_41, %c9_i32, %c0_i32_44] : memref<2x32x128xf32, #tpu.memory_space<vmem>> -> memref<1x1x128xf32, #tpu.memory_space<vmem>>
    %77 = tpu.memref_squeeze %76 : memref<1x1x128xf32, #tpu.memory_space<vmem>> -> memref<128xf32, #tpu.memory_space<vmem>>
    %78 = tpu.memref_slice %arg10[%c0_i32_42] : memref<3x!tpu.dma_semaphore, #tpu.memory_space<semaphore_mem>> -> memref<1x!tpu.dma_semaphore, #tpu.memory_space<semaphore_mem>>
    %79 = tpu.memref_squeeze %78 : memref<1x!tpu.dma_semaphore, #tpu.memory_space<semaphore_mem>> -> memref<!tpu.dma_semaphore, #tpu.memory_space<semaphore_mem>>
    tpu.enqueue_dma source(%75 : memref<128xf32, #tpu.memory_space<any>>) target(%77 : memref<128xf32, #tpu.memory_space<vmem>>) target_semaphore(%79 : memref<!tpu.dma_semaphore, #tpu.memory_space<semaphore_mem>>)
    %c10 = arith.constant 10 : index
    %80 = memref.load %arg8[%c10] : memref<32xi32, #tpu.memory_space<smem>>
    %c0_i32_45 = arith.constant 0 : i32
    %c10_i32 = arith.constant 10 : i32
    %c0_i32_46 = arith.constant 0 : i32
    %c0_i32_47 = arith.constant 0 : i32
    %81 = tpu.memref_slice %arg6[%80, %c0_i32_47] : memref<64x128xf32, #tpu.memory_space<any>> -> memref<1x128xf32, #tpu.memory_space<any>>
    %82 = tpu.memref_squeeze %81 : memref<1x128xf32, #tpu.memory_space<any>> -> memref<128xf32, #tpu.memory_space<any>>
    %c0_i32_48 = arith.constant 0 : i32
    %83 = tpu.memref_slice %arg9[%c0_i32_45, %c10_i32, %c0_i32_48] : memref<2x32x128xf32, #tpu.memory_space<vmem>> -> memref<1x1x128xf32, #tpu.memory_space<vmem>>
    %84 = tpu.memref_squeeze %83 : memref<1x1x128xf32, #tpu.memory_space<vmem>> -> memref<128xf32, #tpu.memory_space<vmem>>
    %85 = tpu.memref_slice %arg10[%c0_i32_46] : memref<3x!tpu.dma_semaphore, #tpu.memory_space<semaphore_mem>> -> memref<1x!tpu.dma_semaphore, #tpu.memory_space<semaphore_mem>>
    %86 = tpu.memref_squeeze %85 : memref<1x!tpu.dma_semaphore, #tpu.memory_space<semaphore_mem>> -> memref<!tpu.dma_semaphore, #tpu.memory_space<semaphore_mem>>
    tpu.enqueue_dma source(%82 : memref<128xf32, #tpu.memory_space<any>>) target(%84 : memref<128xf32, #tpu.memory_space<vmem>>) target_semaphore(%86 : memref<!tpu.dma_semaphore, #tpu.memory_space<semaphore_mem>>)
    %c11 = arith.constant 11 : index
    %87 = memref.load %arg8[%c11] : memref<32xi32, #tpu.memory_space<smem>>
    %c0_i32_49 = arith.constant 0 : i32
    %c11_i32 = arith.constant 11 : i32
    %c0_i32_50 = arith.constant 0 : i32
    %c0_i32_51 = arith.constant 0 : i32
    %88 = tpu.memref_slice %arg6[%87, %c0_i32_51] : memref<64x128xf32, #tpu.memory_space<any>> -> memref<1x128xf32, #tpu.memory_space<any>>
    %89 = tpu.memref_squeeze %88 : memref<1x128xf32, #tpu.memory_space<any>> -> memref<128xf32, #tpu.memory_space<any>>
    %c0_i32_52 = arith.constant 0 : i32
    %90 = tpu.memref_slice %arg9[%c0_i32_49, %c11_i32, %c0_i32_52] : memref<2x32x128xf32, #tpu.memory_space<vmem>> -> memref<1x1x128xf32, #tpu.memory_space<vmem>>
    %91 = tpu.memref_squeeze %90 : memref<1x1x128xf32, #tpu.memory_space<vmem>> -> memref<128xf32, #tpu.memory_space<vmem>>
    %92 = tpu.memref_slice %arg10[%c0_i32_50] : memref<3x!tpu.dma_semaphore, #tpu.memory_space<semaphore_mem>> -> memref<1x!tpu.dma_semaphore, #tpu.memory_space<semaphore_mem>>
    %93 = tpu.memref_squeeze %92 : memref<1x!tpu.dma_semaphore, #tpu.memory_space<semaphore_mem>> -> memref<!tpu.dma_semaphore, #tpu.memory_space<semaphore_mem>>
    tpu.enqueue_dma source(%89 : memref<128xf32, #tpu.memory_space<any>>) target(%91 : memref<128xf32, #tpu.memory_space<vmem>>) target_semaphore(%93 : memref<!tpu.dma_semaphore, #tpu.memory_space<semaphore_mem>>)
    %c12 = arith.constant 12 : index
    %94 = memref.load %arg8[%c12] : memref<32xi32, #tpu.memory_space<smem>>
    %c0_i32_53 = arith.constant 0 : i32
    %c12_i32 = arith.constant 12 : i32
    %c0_i32_54 = arith.constant 0 : i32
    %c0_i32_55 = arith.constant 0 : i32
    %95 = tpu.memref_slice %arg6[%94, %c0_i32_55] : memref<64x128xf32, #tpu.memory_space<any>> -> memref<1x128xf32, #tpu.memory_space<any>>
    %96 = tpu.memref_squeeze %95 : memref<1x128xf32, #tpu.memory_space<any>> -> memref<128xf32, #tpu.memory_space<any>>
    %c0_i32_56 = arith.constant 0 : i32
    %97 = tpu.memref_slice %arg9[%c0_i32_53, %c12_i32, %c0_i32_56] : memref<2x32x128xf32, #tpu.memory_space<vmem>> -> memref<1x1x128xf32, #tpu.memory_space<vmem>>
    %98 = tpu.memref_squeeze %97 : memref<1x1x128xf32, #tpu.memory_space<vmem>> -> memref<128xf32, #tpu.memory_space<vmem>>
    %99 = tpu.memref_slice %arg10[%c0_i32_54] : memref<3x!tpu.dma_semaphore, #tpu.memory_space<semaphore_mem>> -> memref<1x!tpu.dma_semaphore, #tpu.memory_space<semaphore_mem>>
    %100 = tpu.memref_squeeze %99 : memref<1x!tpu.dma_semaphore, #tpu.memory_space<semaphore_mem>> -> memref<!tpu.dma_semaphore, #tpu.memory_space<semaphore_mem>>
    tpu.enqueue_dma source(%96 : memref<128xf32, #tpu.memory_space<any>>) target(%98 : memref<128xf32, #tpu.memory_space<vmem>>) target_semaphore(%100 : memref<!tpu.dma_semaphore, #tpu.memory_space<semaphore_mem>>)
    %c13 = arith.constant 13 : index
    %101 = memref.load %arg8[%c13] : memref<32xi32, #tpu.memory_space<smem>>
    %c0_i32_57 = arith.constant 0 : i32
    %c13_i32 = arith.constant 13 : i32
    %c0_i32_58 = arith.constant 0 : i32
    %c0_i32_59 = arith.constant 0 : i32
    %102 = tpu.memref_slice %arg6[%101, %c0_i32_59] : memref<64x128xf32, #tpu.memory_space<any>> -> memref<1x128xf32, #tpu.memory_space<any>>
    %103 = tpu.memref_squeeze %102 : memref<1x128xf32, #tpu.memory_space<any>> -> memref<128xf32, #tpu.memory_space<any>>
    %c0_i32_60 = arith.constant 0 : i32
    %104 = tpu.memref_slice %arg9[%c0_i32_57, %c13_i32, %c0_i32_60] : memref<2x32x128xf32, #tpu.memory_space<vmem>> -> memref<1x1x128xf32, #tpu.memory_space<vmem>>
    %105 = tpu.memref_squeeze %104 : memref<1x1x128xf32, #tpu.memory_space<vmem>> -> memref<128xf32, #tpu.memory_space<vmem>>
    %106 = tpu.memref_slice %arg10[%c0_i32_58] : memref<3x!tpu.dma_semaphore, #tpu.memory_space<semaphore_mem>> -> memref<1x!tpu.dma_semaphore, #tpu.memory_space<semaphore_mem>>
    %107 = tpu.memref_squeeze %106 : memref<1x!tpu.dma_semaphore, #tpu.memory_space<semaphore_mem>> -> memref<!tpu.dma_semaphore, #tpu.memory_space<semaphore_mem>>
    tpu.enqueue_dma source(%103 : memref<128xf32, #tpu.memory_space<any>>) target(%105 : memref<128xf32, #tpu.memory_space<vmem>>) target_semaphore(%107 : memref<!tpu.dma_semaphore, #tpu.memory_space<semaphore_mem>>)
    %c14 = arith.constant 14 : index
    %108 = memref.load %arg8[%c14] : memref<32xi32, #tpu.memory_space<smem>>
    %c0_i32_61 = arith.constant 0 : i32
    %c14_i32 = arith.constant 14 : i32
    %c0_i32_62 = arith.constant 0 : i32
    %c0_i32_63 = arith.constant 0 : i32
    %109 = tpu.memref_slice %arg6[%108, %c0_i32_63] : memref<64x128xf32, #tpu.memory_space<any>> -> memref<1x128xf32, #tpu.memory_space<any>>
    %110 = tpu.memref_squeeze %109 : memref<1x128xf32, #tpu.memory_space<any>> -> memref<128xf32, #tpu.memory_space<any>>
    %c0_i32_64 = arith.constant 0 : i32
    %111 = tpu.memref_slice %arg9[%c0_i32_61, %c14_i32, %c0_i32_64] : memref<2x32x128xf32, #tpu.memory_space<vmem>> -> memref<1x1x128xf32, #tpu.memory_space<vmem>>
    %112 = tpu.memref_squeeze %111 : memref<1x1x128xf32, #tpu.memory_space<vmem>> -> memref<128xf32, #tpu.memory_space<vmem>>
    %113 = tpu.memref_slice %arg10[%c0_i32_62] : memref<3x!tpu.dma_semaphore, #tpu.memory_space<semaphore_mem>> -> memref<1x!tpu.dma_semaphore, #tpu.memory_space<semaphore_mem>>
    %114 = tpu.memref_squeeze %113 : memref<1x!tpu.dma_semaphore, #tpu.memory_space<semaphore_mem>> -> memref<!tpu.dma_semaphore, #tpu.memory_space<semaphore_mem>>
    tpu.enqueue_dma source(%110 : memref<128xf32, #tpu.memory_space<any>>) target(%112 : memref<128xf32, #tpu.memory_space<vmem>>) target_semaphore(%114 : memref<!tpu.dma_semaphore, #tpu.memory_space<semaphore_mem>>)
    %c15 = arith.constant 15 : index
    %115 = memref.load %arg8[%c15] : memref<32xi32, #tpu.memory_space<smem>>
    %c0_i32_65 = arith.constant 0 : i32
    %c15_i32 = arith.constant 15 : i32
    %c0_i32_66 = arith.constant 0 : i32
    %c0_i32_67 = arith.constant 0 : i32
    %116 = tpu.memref_slice %arg6[%115, %c0_i32_67] : memref<64x128xf32, #tpu.memory_space<any>> -> memref<1x128xf32, #tpu.memory_space<any>>
    %117 = tpu.memref_squeeze %116 : memref<1x128xf32, #tpu.memory_space<any>> -> memref<128xf32, #tpu.memory_space<any>>
    %c0_i32_68 = arith.constant 0 : i32
    %118 = tpu.memref_slice %arg9[%c0_i32_65, %c15_i32, %c0_i32_68] : memref<2x32x128xf32, #tpu.memory_space<vmem>> -> memref<1x1x128xf32, #tpu.memory_space<vmem>>
    %119 = tpu.memref_squeeze %118 : memref<1x1x128xf32, #tpu.memory_space<vmem>> -> memref<128xf32, #tpu.memory_space<vmem>>
    %120 = tpu.memref_slice %arg10[%c0_i32_66] : memref<3x!tpu.dma_semaphore, #tpu.memory_space<semaphore_mem>> -> memref<1x!tpu.dma_semaphore, #tpu.memory_space<semaphore_mem>>
    %121 = tpu.memref_squeeze %120 : memref<1x!tpu.dma_semaphore, #tpu.memory_space<semaphore_mem>> -> memref<!tpu.dma_semaphore, #tpu.memory_space<semaphore_mem>>
    tpu.enqueue_dma source(%117 : memref<128xf32, #tpu.memory_space<any>>) target(%119 : memref<128xf32, #tpu.memory_space<vmem>>) target_semaphore(%121 : memref<!tpu.dma_semaphore, #tpu.memory_space<semaphore_mem>>)
    %c16 = arith.constant 16 : index
    %122 = memref.load %arg8[%c16] : memref<32xi32, #tpu.memory_space<smem>>
    %c0_i32_69 = arith.constant 0 : i32
    %c16_i32 = arith.constant 16 : i32
    %c0_i32_70 = arith.constant 0 : i32
    %c0_i32_71 = arith.constant 0 : i32
    %123 = tpu.memref_slice %arg6[%122, %c0_i32_71] : memref<64x128xf32, #tpu.memory_space<any>> -> memref<1x128xf32, #tpu.memory_space<any>>
    %124 = tpu.memref_squeeze %123 : memref<1x128xf32, #tpu.memory_space<any>> -> memref<128xf32, #tpu.memory_space<any>>
    %c0_i32_72 = arith.constant 0 : i32
    %125 = tpu.memref_slice %arg9[%c0_i32_69, %c16_i32, %c0_i32_72] : memref<2x32x128xf32, #tpu.memory_space<vmem>> -> memref<1x1x128xf32, #tpu.memory_space<vmem>>
    %126 = tpu.memref_squeeze %125 : memref<1x1x128xf32, #tpu.memory_space<vmem>> -> memref<128xf32, #tpu.memory_space<vmem>>
    %127 = tpu.memref_slice %arg10[%c0_i32_70] : memref<3x!tpu.dma_semaphore, #tpu.memory_space<semaphore_mem>> -> memref<1x!tpu.dma_semaphore, #tpu.memory_space<semaphore_mem>>
    %128 = tpu.memref_squeeze %127 : memref<1x!tpu.dma_semaphore, #tpu.memory_space<semaphore_mem>> -> memref<!tpu.dma_semaphore, #tpu.memory_space<semaphore_mem>>
    tpu.enqueue_dma source(%124 : memref<128xf32, #tpu.memory_space<any>>) target(%126 : memref<128xf32, #tpu.memory_space<vmem>>) target_semaphore(%128 : memref<!tpu.dma_semaphore, #tpu.memory_space<semaphore_mem>>)
    %c17 = arith.constant 17 : index
    %129 = memref.load %arg8[%c17] : memref<32xi32, #tpu.memory_space<smem>>
    %c0_i32_73 = arith.constant 0 : i32
    %c17_i32 = arith.constant 17 : i32
    %c0_i32_74 = arith.constant 0 : i32
    %c0_i32_75 = arith.constant 0 : i32
    %130 = tpu.memref_slice %arg6[%129, %c0_i32_75] : memref<64x128xf32, #tpu.memory_space<any>> -> memref<1x128xf32, #tpu.memory_space<any>>
    %131 = tpu.memref_squeeze %130 : memref<1x128xf32, #tpu.memory_space<any>> -> memref<128xf32, #tpu.memory_space<any>>
    %c0_i32_76 = arith.constant 0 : i32
    %132 = tpu.memref_slice %arg9[%c0_i32_73, %c17_i32, %c0_i32_76] : memref<2x32x128xf32, #tpu.memory_space<vmem>> -> memref<1x1x128xf32, #tpu.memory_space<vmem>>
    %133 = tpu.memref_squeeze %132 : memref<1x1x128xf32, #tpu.memory_space<vmem>> -> memref<128xf32, #tpu.memory_space<vmem>>
    %134 = tpu.memref_slice %arg10[%c0_i32_74] : memref<3x!tpu.dma_semaphore, #tpu.memory_space<semaphore_mem>> -> memref<1x!tpu.dma_semaphore, #tpu.memory_space<semaphore_mem>>
    %135 = tpu.memref_squeeze %134 : memref<1x!tpu.dma_semaphore, #tpu.memory_space<semaphore_mem>> -> memref<!tpu.dma_semaphore, #tpu.memory_space<semaphore_mem>>
    tpu.enqueue_dma source(%131 : memref<128xf32, #tpu.memory_space<any>>) target(%133 : memref<128xf32, #tpu.memory_space<vmem>>) target_semaphore(%135 : memref<!tpu.dma_semaphore, #tpu.memory_space<semaphore_mem>>)
    %c18 = arith.constant 18 : index
    %136 = memref.load %arg8[%c18] : memref<32xi32, #tpu.memory_space<smem>>
    %c0_i32_77 = arith.constant 0 : i32
    %c18_i32 = arith.constant 18 : i32
    %c0_i32_78 = arith.constant 0 : i32
    %c0_i32_79 = arith.constant 0 : i32
    %137 = tpu.memref_slice %arg6[%136, %c0_i32_79] : memref<64x128xf32, #tpu.memory_space<any>> -> memref<1x128xf32, #tpu.memory_space<any>>
    %138 = tpu.memref_squeeze %137 : memref<1x128xf32, #tpu.memory_space<any>> -> memref<128xf32, #tpu.memory_space<any>>
    %c0_i32_80 = arith.constant 0 : i32
    %139 = tpu.memref_slice %arg9[%c0_i32_77, %c18_i32, %c0_i32_80] : memref<2x32x128xf32, #tpu.memory_space<vmem>> -> memref<1x1x128xf32, #tpu.memory_space<vmem>>
    %140 = tpu.memref_squeeze %139 : memref<1x1x128xf32, #tpu.memory_space<vmem>> -> memref<128xf32, #tpu.memory_space<vmem>>
    %141 = tpu.memref_slice %arg10[%c0_i32_78] : memref<3x!tpu.dma_semaphore, #tpu.memory_space<semaphore_mem>> -> memref<1x!tpu.dma_semaphore, #tpu.memory_space<semaphore_mem>>
    %142 = tpu.memref_squeeze %141 : memref<1x!tpu.dma_semaphore, #tpu.memory_space<semaphore_mem>> -> memref<!tpu.dma_semaphore, #tpu.memory_space<semaphore_mem>>
    tpu.enqueue_dma source(%138 : memref<128xf32, #tpu.memory_space<any>>) target(%140 : memref<128xf32, #tpu.memory_space<vmem>>) target_semaphore(%142 : memref<!tpu.dma_semaphore, #tpu.memory_space<semaphore_mem>>)
    %c19 = arith.constant 19 : index
    %143 = memref.load %arg8[%c19] : memref<32xi32, #tpu.memory_space<smem>>
    %c0_i32_81 = arith.constant 0 : i32
    %c19_i32 = arith.constant 19 : i32
    %c0_i32_82 = arith.constant 0 : i32
    %c0_i32_83 = arith.constant 0 : i32
    %144 = tpu.memref_slice %arg6[%143, %c0_i32_83] : memref<64x128xf32, #tpu.memory_space<any>> -> memref<1x128xf32, #tpu.memory_space<any>>
    %145 = tpu.memref_squeeze %144 : memref<1x128xf32, #tpu.memory_space<any>> -> memref<128xf32, #tpu.memory_space<any>>
    %c0_i32_84 = arith.constant 0 : i32
    %146 = tpu.memref_slice %arg9[%c0_i32_81, %c19_i32, %c0_i32_84] : memref<2x32x128xf32, #tpu.memory_space<vmem>> -> memref<1x1x128xf32, #tpu.memory_space<vmem>>
    %147 = tpu.memref_squeeze %146 : memref<1x1x128xf32, #tpu.memory_space<vmem>> -> memref<128xf32, #tpu.memory_space<vmem>>
    %148 = tpu.memref_slice %arg10[%c0_i32_82] : memref<3x!tpu.dma_semaphore, #tpu.memory_space<semaphore_mem>> -> memref<1x!tpu.dma_semaphore, #tpu.memory_space<semaphore_mem>>
    %149 = tpu.memref_squeeze %148 : memref<1x!tpu.dma_semaphore, #tpu.memory_space<semaphore_mem>> -> memref<!tpu.dma_semaphore, #tpu.memory_space<semaphore_mem>>
    tpu.enqueue_dma source(%145 : memref<128xf32, #tpu.memory_space<any>>) target(%147 : memref<128xf32, #tpu.memory_space<vmem>>) target_semaphore(%149 : memref<!tpu.dma_semaphore, #tpu.memory_space<semaphore_mem>>)
    %c20 = arith.constant 20 : index
    %150 = memref.load %arg8[%c20] : memref<32xi32, #tpu.memory_space<smem>>
    %c0_i32_85 = arith.constant 0 : i32
    %c20_i32 = arith.constant 20 : i32
    %c0_i32_86 = arith.constant 0 : i32
    %c0_i32_87 = arith.constant 0 : i32
    %151 = tpu.memref_slice %arg6[%150, %c0_i32_87] : memref<64x128xf32, #tpu.memory_space<any>> -> memref<1x128xf32, #tpu.memory_space<any>>
    %152 = tpu.memref_squeeze %151 : memref<1x128xf32, #tpu.memory_space<any>> -> memref<128xf32, #tpu.memory_space<any>>
    %c0_i32_88 = arith.constant 0 : i32
    %153 = tpu.memref_slice %arg9[%c0_i32_85, %c20_i32, %c0_i32_88] : memref<2x32x128xf32, #tpu.memory_space<vmem>> -> memref<1x1x128xf32, #tpu.memory_space<vmem>>
    %154 = tpu.memref_squeeze %153 : memref<1x1x128xf32, #tpu.memory_space<vmem>> -> memref<128xf32, #tpu.memory_space<vmem>>
    %155 = tpu.memref_slice %arg10[%c0_i32_86] : memref<3x!tpu.dma_semaphore, #tpu.memory_space<semaphore_mem>> -> memref<1x!tpu.dma_semaphore, #tpu.memory_space<semaphore_mem>>
    %156 = tpu.memref_squeeze %155 : memref<1x!tpu.dma_semaphore, #tpu.memory_space<semaphore_mem>> -> memref<!tpu.dma_semaphore, #tpu.memory_space<semaphore_mem>>
    tpu.enqueue_dma source(%152 : memref<128xf32, #tpu.memory_space<any>>) target(%154 : memref<128xf32, #tpu.memory_space<vmem>>) target_semaphore(%156 : memref<!tpu.dma_semaphore, #tpu.memory_space<semaphore_mem>>)
    %c21 = arith.constant 21 : index
    %157 = memref.load %arg8[%c21] : memref<32xi32, #tpu.memory_space<smem>>
    %c0_i32_89 = arith.constant 0 : i32
    %c21_i32 = arith.constant 21 : i32
    %c0_i32_90 = arith.constant 0 : i32
    %c0_i32_91 = arith.constant 0 : i32
    %158 = tpu.memref_slice %arg6[%157, %c0_i32_91] : memref<64x128xf32, #tpu.memory_space<any>> -> memref<1x128xf32, #tpu.memory_space<any>>
    %159 = tpu.memref_squeeze %158 : memref<1x128xf32, #tpu.memory_space<any>> -> memref<128xf32, #tpu.memory_space<any>>
    %c0_i32_92 = arith.constant 0 : i32
    %160 = tpu.memref_slice %arg9[%c0_i32_89, %c21_i32, %c0_i32_92] : memref<2x32x128xf32, #tpu.memory_space<vmem>> -> memref<1x1x128xf32, #tpu.memory_space<vmem>>
    %161 = tpu.memref_squeeze %160 : memref<1x1x128xf32, #tpu.memory_space<vmem>> -> memref<128xf32, #tpu.memory_space<vmem>>
    %162 = tpu.memref_slice %arg10[%c0_i32_90] : memref<3x!tpu.dma_semaphore, #tpu.memory_space<semaphore_mem>> -> memref<1x!tpu.dma_semaphore, #tpu.memory_space<semaphore_mem>>
    %163 = tpu.memref_squeeze %162 : memref<1x!tpu.dma_semaphore, #tpu.memory_space<semaphore_mem>> -> memref<!tpu.dma_semaphore, #tpu.memory_space<semaphore_mem>>
    tpu.enqueue_dma source(%159 : memref<128xf32, #tpu.memory_space<any>>) target(%161 : memref<128xf32, #tpu.memory_space<vmem>>) target_semaphore(%163 : memref<!tpu.dma_semaphore, #tpu.memory_space<semaphore_mem>>)
    %c22 = arith.constant 22 : index
    %164 = memref.load %arg8[%c22] : memref<32xi32, #tpu.memory_space<smem>>
    %c0_i32_93 = arith.constant 0 : i32
    %c22_i32 = arith.constant 22 : i32
    %c0_i32_94 = arith.constant 0 : i32
    %c0_i32_95 = arith.constant 0 : i32
    %165 = tpu.memref_slice %arg6[%164, %c0_i32_95] : memref<64x128xf32, #tpu.memory_space<any>> -> memref<1x128xf32, #tpu.memory_space<any>>
    %166 = tpu.memref_squeeze %165 : memref<1x128xf32, #tpu.memory_space<any>> -> memref<128xf32, #tpu.memory_space<any>>
    %c0_i32_96 = arith.constant 0 : i32
    %167 = tpu.memref_slice %arg9[%c0_i32_93, %c22_i32, %c0_i32_96] : memref<2x32x128xf32, #tpu.memory_space<vmem>> -> memref<1x1x128xf32, #tpu.memory_space<vmem>>
    %168 = tpu.memref_squeeze %167 : memref<1x1x128xf32, #tpu.memory_space<vmem>> -> memref<128xf32, #tpu.memory_space<vmem>>
    %169 = tpu.memref_slice %arg10[%c0_i32_94] : memref<3x!tpu.dma_semaphore, #tpu.memory_space<semaphore_mem>> -> memref<1x!tpu.dma_semaphore, #tpu.memory_space<semaphore_mem>>
    %170 = tpu.memref_squeeze %169 : memref<1x!tpu.dma_semaphore, #tpu.memory_space<semaphore_mem>> -> memref<!tpu.dma_semaphore, #tpu.memory_space<semaphore_mem>>
    tpu.enqueue_dma source(%166 : memref<128xf32, #tpu.memory_space<any>>) target(%168 : memref<128xf32, #tpu.memory_space<vmem>>) target_semaphore(%170 : memref<!tpu.dma_semaphore, #tpu.memory_space<semaphore_mem>>)
    %c23 = arith.constant 23 : index
    %171 = memref.load %arg8[%c23] : memref<32xi32, #tpu.memory_space<smem>>
    %c0_i32_97 = arith.constant 0 : i32
    %c23_i32 = arith.constant 23 : i32
    %c0_i32_98 = arith.constant 0 : i32
    %c0_i32_99 = arith.constant 0 : i32
    %172 = tpu.memref_slice %arg6[%171, %c0_i32_99] : memref<64x128xf32, #tpu.memory_space<any>> -> memref<1x128xf32, #tpu.memory_space<any>>
    %173 = tpu.memref_squeeze %172 : memref<1x128xf32, #tpu.memory_space<any>> -> memref<128xf32, #tpu.memory_space<any>>
    %c0_i32_100 = arith.constant 0 : i32
    %174 = tpu.memref_slice %arg9[%c0_i32_97, %c23_i32, %c0_i32_100] : memref<2x32x128xf32, #tpu.memory_space<vmem>> -> memref<1x1x128xf32, #tpu.memory_space<vmem>>
    %175 = tpu.memref_squeeze %174 : memref<1x1x128xf32, #tpu.memory_space<vmem>> -> memref<128xf32, #tpu.memory_space<vmem>>
    %176 = tpu.memref_slice %arg10[%c0_i32_98] : memref<3x!tpu.dma_semaphore, #tpu.memory_space<semaphore_mem>> -> memref<1x!tpu.dma_semaphore, #tpu.memory_space<semaphore_mem>>
    %177 = tpu.memref_squeeze %176 : memref<1x!tpu.dma_semaphore, #tpu.memory_space<semaphore_mem>> -> memref<!tpu.dma_semaphore, #tpu.memory_space<semaphore_mem>>
    tpu.enqueue_dma source(%173 : memref<128xf32, #tpu.memory_space<any>>) target(%175 : memref<128xf32, #tpu.memory_space<vmem>>) target_semaphore(%177 : memref<!tpu.dma_semaphore, #tpu.memory_space<semaphore_mem>>)
    %c24 = arith.constant 24 : index
    %178 = memref.load %arg8[%c24] : memref<32xi32, #tpu.memory_space<smem>>
    %c0_i32_101 = arith.constant 0 : i32
    %c24_i32 = arith.constant 24 : i32
    %c0_i32_102 = arith.constant 0 : i32
    %c0_i32_103 = arith.constant 0 : i32
    %179 = tpu.memref_slice %arg6[%178, %c0_i32_103] : memref<64x128xf32, #tpu.memory_space<any>> -> memref<1x128xf32, #tpu.memory_space<any>>
    %180 = tpu.memref_squeeze %179 : memref<1x128xf32, #tpu.memory_space<any>> -> memref<128xf32, #tpu.memory_space<any>>
    %c0_i32_104 = arith.constant 0 : i32
    %181 = tpu.memref_slice %arg9[%c0_i32_101, %c24_i32, %c0_i32_104] : memref<2x32x128xf32, #tpu.memory_space<vmem>> -> memref<1x1x128xf32, #tpu.memory_space<vmem>>
    %182 = tpu.memref_squeeze %181 : memref<1x1x128xf32, #tpu.memory_space<vmem>> -> memref<128xf32, #tpu.memory_space<vmem>>
    %183 = tpu.memref_slice %arg10[%c0_i32_102] : memref<3x!tpu.dma_semaphore, #tpu.memory_space<semaphore_mem>> -> memref<1x!tpu.dma_semaphore, #tpu.memory_space<semaphore_mem>>
    %184 = tpu.memref_squeeze %183 : memref<1x!tpu.dma_semaphore, #tpu.memory_space<semaphore_mem>> -> memref<!tpu.dma_semaphore, #tpu.memory_space<semaphore_mem>>
    tpu.enqueue_dma source(%180 : memref<128xf32, #tpu.memory_space<any>>) target(%182 : memref<128xf32, #tpu.memory_space<vmem>>) target_semaphore(%184 : memref<!tpu.dma_semaphore, #tpu.memory_space<semaphore_mem>>)
    %c25 = arith.constant 25 : index
    %185 = memref.load %arg8[%c25] : memref<32xi32, #tpu.memory_space<smem>>
    %c0_i32_105 = arith.constant 0 : i32
    %c25_i32 = arith.constant 25 : i32
    %c0_i32_106 = arith.constant 0 : i32
    %c0_i32_107 = arith.constant 0 : i32
    %186 = tpu.memref_slice %arg6[%185, %c0_i32_107] : memref<64x128xf32, #tpu.memory_space<any>> -> memref<1x128xf32, #tpu.memory_space<any>>
    %187 = tpu.memref_squeeze %186 : memref<1x128xf32, #tpu.memory_space<any>> -> memref<128xf32, #tpu.memory_space<any>>
    %c0_i32_108 = arith.constant 0 : i32
    %188 = tpu.memref_slice %arg9[%c0_i32_105, %c25_i32, %c0_i32_108] : memref<2x32x128xf32, #tpu.memory_space<vmem>> -> memref<1x1x128xf32, #tpu.memory_space<vmem>>
    %189 = tpu.memref_squeeze %188 : memref<1x1x128xf32, #tpu.memory_space<vmem>> -> memref<128xf32, #tpu.memory_space<vmem>>
    %190 = tpu.memref_slice %arg10[%c0_i32_106] : memref<3x!tpu.dma_semaphore, #tpu.memory_space<semaphore_mem>> -> memref<1x!tpu.dma_semaphore, #tpu.memory_space<semaphore_mem>>
    %191 = tpu.memref_squeeze %190 : memref<1x!tpu.dma_semaphore, #tpu.memory_space<semaphore_mem>> -> memref<!tpu.dma_semaphore, #tpu.memory_space<semaphore_mem>>
    tpu.enqueue_dma source(%187 : memref<128xf32, #tpu.memory_space<any>>) target(%189 : memref<128xf32, #tpu.memory_space<vmem>>) target_semaphore(%191 : memref<!tpu.dma_semaphore, #tpu.memory_space<semaphore_mem>>)
    %c26 = arith.constant 26 : index
    %192 = memref.load %arg8[%c26] : memref<32xi32, #tpu.memory_space<smem>>
    %c0_i32_109 = arith.constant 0 : i32
    %c26_i32 = arith.constant 26 : i32
    %c0_i32_110 = arith.constant 0 : i32
    %c0_i32_111 = arith.constant 0 : i32
    %193 = tpu.memref_slice %arg6[%192, %c0_i32_111] : memref<64x128xf32, #tpu.memory_space<any>> -> memref<1x128xf32, #tpu.memory_space<any>>
    %194 = tpu.memref_squeeze %193 : memref<1x128xf32, #tpu.memory_space<any>> -> memref<128xf32, #tpu.memory_space<any>>
    %c0_i32_112 = arith.constant 0 : i32
    %195 = tpu.memref_slice %arg9[%c0_i32_109, %c26_i32, %c0_i32_112] : memref<2x32x128xf32, #tpu.memory_space<vmem>> -> memref<1x1x128xf32, #tpu.memory_space<vmem>>
    %196 = tpu.memref_squeeze %195 : memref<1x1x128xf32, #tpu.memory_space<vmem>> -> memref<128xf32, #tpu.memory_space<vmem>>
    %197 = tpu.memref_slice %arg10[%c0_i32_110] : memref<3x!tpu.dma_semaphore, #tpu.memory_space<semaphore_mem>> -> memref<1x!tpu.dma_semaphore, #tpu.memory_space<semaphore_mem>>
    %198 = tpu.memref_squeeze %197 : memref<1x!tpu.dma_semaphore, #tpu.memory_space<semaphore_mem>> -> memref<!tpu.dma_semaphore, #tpu.memory_space<semaphore_mem>>
    tpu.enqueue_dma source(%194 : memref<128xf32, #tpu.memory_space<any>>) target(%196 : memref<128xf32, #tpu.memory_space<vmem>>) target_semaphore(%198 : memref<!tpu.dma_semaphore, #tpu.memory_space<semaphore_mem>>)
    %c27 = arith.constant 27 : index
    %199 = memref.load %arg8[%c27] : memref<32xi32, #tpu.memory_space<smem>>
    %c0_i32_113 = arith.constant 0 : i32
    %c27_i32 = arith.constant 27 : i32
    %c0_i32_114 = arith.constant 0 : i32
    %c0_i32_115 = arith.constant 0 : i32
    %200 = tpu.memref_slice %arg6[%199, %c0_i32_115] : memref<64x128xf32, #tpu.memory_space<any>> -> memref<1x128xf32, #tpu.memory_space<any>>
    %201 = tpu.memref_squeeze %200 : memref<1x128xf32, #tpu.memory_space<any>> -> memref<128xf32, #tpu.memory_space<any>>
    %c0_i32_116 = arith.constant 0 : i32
    %202 = tpu.memref_slice %arg9[%c0_i32_113, %c27_i32, %c0_i32_116] : memref<2x32x128xf32, #tpu.memory_space<vmem>> -> memref<1x1x128xf32, #tpu.memory_space<vmem>>
    %203 = tpu.memref_squeeze %202 : memref<1x1x128xf32, #tpu.memory_space<vmem>> -> memref<128xf32, #tpu.memory_space<vmem>>
    %204 = tpu.memref_slice %arg10[%c0_i32_114] : memref<3x!tpu.dma_semaphore, #tpu.memory_space<semaphore_mem>> -> memref<1x!tpu.dma_semaphore, #tpu.memory_space<semaphore_mem>>
    %205 = tpu.memref_squeeze %204 : memref<1x!tpu.dma_semaphore, #tpu.memory_space<semaphore_mem>> -> memref<!tpu.dma_semaphore, #tpu.memory_space<semaphore_mem>>
    tpu.enqueue_dma source(%201 : memref<128xf32, #tpu.memory_space<any>>) target(%203 : memref<128xf32, #tpu.memory_space<vmem>>) target_semaphore(%205 : memref<!tpu.dma_semaphore, #tpu.memory_space<semaphore_mem>>)
    %c28 = arith.constant 28 : index
    %206 = memref.load %arg8[%c28] : memref<32xi32, #tpu.memory_space<smem>>
    %c0_i32_117 = arith.constant 0 : i32
    %c28_i32 = arith.constant 28 : i32
    %c0_i32_118 = arith.constant 0 : i32
    %c0_i32_119 = arith.constant 0 : i32
    %207 = tpu.memref_slice %arg6[%206, %c0_i32_119] : memref<64x128xf32, #tpu.memory_space<any>> -> memref<1x128xf32, #tpu.memory_space<any>>
    %208 = tpu.memref_squeeze %207 : memref<1x128xf32, #tpu.memory_space<any>> -> memref<128xf32, #tpu.memory_space<any>>
    %c0_i32_120 = arith.constant 0 : i32
    %209 = tpu.memref_slice %arg9[%c0_i32_117, %c28_i32, %c0_i32_120] : memref<2x32x128xf32, #tpu.memory_space<vmem>> -> memref<1x1x128xf32, #tpu.memory_space<vmem>>
    %210 = tpu.memref_squeeze %209 : memref<1x1x128xf32, #tpu.memory_space<vmem>> -> memref<128xf32, #tpu.memory_space<vmem>>
    %211 = tpu.memref_slice %arg10[%c0_i32_118] : memref<3x!tpu.dma_semaphore, #tpu.memory_space<semaphore_mem>> -> memref<1x!tpu.dma_semaphore, #tpu.memory_space<semaphore_mem>>
    %212 = tpu.memref_squeeze %211 : memref<1x!tpu.dma_semaphore, #tpu.memory_space<semaphore_mem>> -> memref<!tpu.dma_semaphore, #tpu.memory_space<semaphore_mem>>
    tpu.enqueue_dma source(%208 : memref<128xf32, #tpu.memory_space<any>>) target(%210 : memref<128xf32, #tpu.memory_space<vmem>>) target_semaphore(%212 : memref<!tpu.dma_semaphore, #tpu.memory_space<semaphore_mem>>)
    %c29 = arith.constant 29 : index
    %213 = memref.load %arg8[%c29] : memref<32xi32, #tpu.memory_space<smem>>
    %c0_i32_121 = arith.constant 0 : i32
    %c29_i32 = arith.constant 29 : i32
    %c0_i32_122 = arith.constant 0 : i32
    %c0_i32_123 = arith.constant 0 : i32
    %214 = tpu.memref_slice %arg6[%213, %c0_i32_123] : memref<64x128xf32, #tpu.memory_space<any>> -> memref<1x128xf32, #tpu.memory_space<any>>
    %215 = tpu.memref_squeeze %214 : memref<1x128xf32, #tpu.memory_space<any>> -> memref<128xf32, #tpu.memory_space<any>>
    %c0_i32_124 = arith.constant 0 : i32
    %216 = tpu.memref_slice %arg9[%c0_i32_121, %c29_i32, %c0_i32_124] : memref<2x32x128xf32, #tpu.memory_space<vmem>> -> memref<1x1x128xf32, #tpu.memory_space<vmem>>
    %217 = tpu.memref_squeeze %216 : memref<1x1x128xf32, #tpu.memory_space<vmem>> -> memref<128xf32, #tpu.memory_space<vmem>>
    %218 = tpu.memref_slice %arg10[%c0_i32_122] : memref<3x!tpu.dma_semaphore, #tpu.memory_space<semaphore_mem>> -> memref<1x!tpu.dma_semaphore, #tpu.memory_space<semaphore_mem>>
    %219 = tpu.memref_squeeze %218 : memref<1x!tpu.dma_semaphore, #tpu.memory_space<semaphore_mem>> -> memref<!tpu.dma_semaphore, #tpu.memory_space<semaphore_mem>>
    tpu.enqueue_dma source(%215 : memref<128xf32, #tpu.memory_space<any>>) target(%217 : memref<128xf32, #tpu.memory_space<vmem>>) target_semaphore(%219 : memref<!tpu.dma_semaphore, #tpu.memory_space<semaphore_mem>>)
    %c30 = arith.constant 30 : index
    %220 = memref.load %arg8[%c30] : memref<32xi32, #tpu.memory_space<smem>>
    %c0_i32_125 = arith.constant 0 : i32
    %c30_i32 = arith.constant 30 : i32
    %c0_i32_126 = arith.constant 0 : i32
    %c0_i32_127 = arith.constant 0 : i32
    %221 = tpu.memref_slice %arg6[%220, %c0_i32_127] : memref<64x128xf32, #tpu.memory_space<any>> -> memref<1x128xf32, #tpu.memory_space<any>>
    %222 = tpu.memref_squeeze %221 : memref<1x128xf32, #tpu.memory_space<any>> -> memref<128xf32, #tpu.memory_space<any>>
    %c0_i32_128 = arith.constant 0 : i32
    %223 = tpu.memref_slice %arg9[%c0_i32_125, %c30_i32, %c0_i32_128] : memref<2x32x128xf32, #tpu.memory_space<vmem>> -> memref<1x1x128xf32, #tpu.memory_space<vmem>>
    %224 = tpu.memref_squeeze %223 : memref<1x1x128xf32, #tpu.memory_space<vmem>> -> memref<128xf32, #tpu.memory_space<vmem>>
    %225 = tpu.memref_slice %arg10[%c0_i32_126] : memref<3x!tpu.dma_semaphore, #tpu.memory_space<semaphore_mem>> -> memref<1x!tpu.dma_semaphore, #tpu.memory_space<semaphore_mem>>
    %226 = tpu.memref_squeeze %225 : memref<1x!tpu.dma_semaphore, #tpu.memory_space<semaphore_mem>> -> memref<!tpu.dma_semaphore, #tpu.memory_space<semaphore_mem>>
    tpu.enqueue_dma source(%222 : memref<128xf32, #tpu.memory_space<any>>) target(%224 : memref<128xf32, #tpu.memory_space<vmem>>) target_semaphore(%226 : memref<!tpu.dma_semaphore, #tpu.memory_space<semaphore_mem>>)
    %c31 = arith.constant 31 : index
    %227 = memref.load %arg8[%c31] : memref<32xi32, #tpu.memory_space<smem>>
    %c0_i32_129 = arith.constant 0 : i32
    %c31_i32 = arith.constant 31 : i32
    %c0_i32_130 = arith.constant 0 : i32
    %c0_i32_131 = arith.constant 0 : i32
    %228 = tpu.memref_slice %arg6[%227, %c0_i32_131] : memref<64x128xf32, #tpu.memory_space<any>> -> memref<1x128xf32, #tpu.memory_space<any>>
    %229 = tpu.memref_squeeze %228 : memref<1x128xf32, #tpu.memory_space<any>> -> memref<128xf32, #tpu.memory_space<any>>
    %c0_i32_132 = arith.constant 0 : i32
    %230 = tpu.memref_slice %arg9[%c0_i32_129, %c31_i32, %c0_i32_132] : memref<2x32x128xf32, #tpu.memory_space<vmem>> -> memref<1x1x128xf32, #tpu.memory_space<vmem>>
    %231 = tpu.memref_squeeze %230 : memref<1x1x128xf32, #tpu.memory_space<vmem>> -> memref<128xf32, #tpu.memory_space<vmem>>
    %232 = tpu.memref_slice %arg10[%c0_i32_130] : memref<3x!tpu.dma_semaphore, #tpu.memory_space<semaphore_mem>> -> memref<1x!tpu.dma_semaphore, #tpu.memory_space<semaphore_mem>>
    %233 = tpu.memref_squeeze %232 : memref<1x!tpu.dma_semaphore, #tpu.memory_space<semaphore_mem>> -> memref<!tpu.dma_semaphore, #tpu.memory_space<semaphore_mem>>
    tpu.enqueue_dma source(%229 : memref<128xf32, #tpu.memory_space<any>>) target(%231 : memref<128xf32, #tpu.memory_space<vmem>>) target_semaphore(%233 : memref<!tpu.dma_semaphore, #tpu.memory_space<semaphore_mem>>)
    %c0_133 = arith.constant 0 : index
    %c0_134 = arith.constant 0 : index
    %234 = vector.load %arg4[%c0_133, %c0_134] : memref<1x128xf32, #tpu.memory_space<vmem>>, vector<1x128xf32>
    %c0_135 = arith.constant 0 : index
    %c0_136 = arith.constant 0 : index
    %235 = vector.load %arg5[%c0_135, %c0_136] : memref<1x128xf32, #tpu.memory_space<vmem>>, vector<1x128xf32>
    %c0_i32_137 = arith.constant 0 : i32
    %c0_i32_138 = arith.constant 0 : i32
    %c0_i32_139 = arith.constant 0 : i32
    %c0_i32_140 = arith.constant 0 : i32
    %c0_i32_141 = arith.constant 0 : i32
    %236 = tpu.memref_slice %arg9[%c0_i32_137, %c0_i32_140, %c0_i32_141] : memref<2x32x128xf32, #tpu.memory_space<vmem>> -> memref<1x32x128xf32, #tpu.memory_space<vmem>>
    %237 = tpu.memref_squeeze %236 : memref<1x32x128xf32, #tpu.memory_space<vmem>> -> memref<32x128xf32, #tpu.memory_space<vmem>>
    %c0_i32_142 = arith.constant 0 : i32
    %c0_i32_143 = arith.constant 0 : i32
    %238 = tpu.memref_slice %arg9[%c0_i32_138, %c0_i32_142, %c0_i32_143] : memref<2x32x128xf32, #tpu.memory_space<vmem>> -> memref<1x32x128xf32, #tpu.memory_space<vmem>>
    %239 = tpu.memref_squeeze %238 : memref<1x32x128xf32, #tpu.memory_space<vmem>> -> memref<32x128xf32, #tpu.memory_space<vmem>>
    %240 = tpu.memref_slice %arg10[%c0_i32_139] : memref<3x!tpu.dma_semaphore, #tpu.memory_space<semaphore_mem>> -> memref<1x!tpu.dma_semaphore, #tpu.memory_space<semaphore_mem>>
    %241 = tpu.memref_squeeze %240 : memref<1x!tpu.dma_semaphore, #tpu.memory_space<semaphore_mem>> -> memref<!tpu.dma_semaphore, #tpu.memory_space<semaphore_mem>>
    tpu.wait_dma2 semaphore(%241 : memref<!tpu.dma_semaphore, #tpu.memory_space<semaphore_mem>>) src(%237 : memref<32x128xf32, #tpu.memory_space<vmem>>) dst(%239 : memref<32x128xf32, #tpu.memory_space<vmem>>)
    %c0_144 = arith.constant 0 : index
    %c0_145 = arith.constant 0 : index
    %c0_146 = arith.constant 0 : index
    %242 = vector.load %arg9[%c0_144, %c0_145, %c0_146] : memref<2x32x128xf32, #tpu.memory_space<vmem>>, vector<1x32x128xf32>
    %243 = vector.shape_cast %242 : vector<1x32x128xf32> to vector<32x128xf32>
    %244 = vector.shape_cast %243 : vector<32x128xf32> to vector<8x4x128xf32>
    %cst = arith.constant dense<0.000000e+00> : vector<8x128xf32>
    %245 = vector.multi_reduction <add>, %244, %cst [1] : vector<8x4x128xf32> to vector<8x128xf32>
    %c0_147 = arith.constant 0 : index
    %c0_148 = arith.constant 0 : index
    %246 = vector.load %arg3[%c0_147, %c0_148] : memref<8x128xf32, #tpu.memory_space<vmem>>, vector<8x128xf32>
    %247 = arith.addf %245, %246 : vector<8x128xf32>
    %cst_149 = arith.constant dense<0.000000e+00> : vector<8xf32>
    %248 = vector.multi_reduction <add>, %247, %cst_149 [1] : vector<8x128xf32> to vector<8xf32>
    %249 = vector.shape_cast %248 : vector<8xf32> to vector<8x1xf32>
    %cst_150 = arith.constant 1.280000e+02 : f32
    %250 = vector.broadcast %cst_150 : f32 to vector<8x1xf32>
    %251 = arith.divf %249, %250 : vector<8x1xf32>
    %252 = vector.broadcast %251 : vector<8x1xf32> to vector<8x128xf32>
    %253 = arith.subf %247, %252 : vector<8x128xf32>
    %254 = arith.mulf %253, %253 : vector<8x128xf32>
    %cst_151 = arith.constant dense<0.000000e+00> : vector<8xf32>
    %255 = vector.multi_reduction <add>, %254, %cst_151 [1] : vector<8x128xf32> to vector<8xf32>
    %256 = vector.shape_cast %255 : vector<8xf32> to vector<8x1xf32>
    %cst_152 = arith.constant 1.280000e+02 : f32
    %257 = vector.broadcast %cst_152 : f32 to vector<8x1xf32>
    %258 = arith.divf %256, %257 : vector<8x1xf32>
    %cst_153 = arith.constant 9.99999996E-13 : f32
    %259 = vector.broadcast %cst_153 : f32 to vector<8x1xf32>
    %260 = arith.addf %258, %259 : vector<8x1xf32>
    %261 = math.rsqrt %260 : vector<8x1xf32>
    %262 = vector.broadcast %261 : vector<8x1xf32> to vector<8x128xf32>
    %263 = vector.broadcast %234 : vector<1x128xf32> to vector<8x128xf32>
    %264 = arith.mulf %262, %263 : vector<8x128xf32>
    %265 = vector.broadcast %251 : vector<8x1xf32> to vector<8x128xf32>
    %266 = arith.subf %247, %265 : vector<8x128xf32>
    %267 = arith.mulf %266, %264 : vector<8x128xf32>
    %268 = vector.broadcast %235 : vector<1x128xf32> to vector<8x128xf32>
    %269 = arith.addf %267, %268 : vector<8x128xf32>
    %c0_154 = arith.constant 0 : index
    %c0_155 = arith.constant 0 : index
    %c0_156 = arith.constant 0 : index
    %270 = vector.load %arg7[%c0_154, %c0_155, %c0_156] : memref<1x8x128xf32, #tpu.memory_space<vmem>>, vector<1x8x128xf32>
    %271 = vector.shape_cast %270 : vector<1x8x128xf32> to vector<8x128xf32>
    %272 = vector.shape_cast %269 : vector<8x128xf32> to vector<1x8x128xf32>
    tpu.vector_store %arg7[%c0_154, %c0_155, %c0_156], %272 {strides = array<i32>} : memref<1x8x128xf32, #tpu.memory_space<vmem>>, vector<1x8x128xf32>,
    return
  }
  func.func @transform_1(%arg0: i32, %arg1: i32) -> (i32, i32) {
    %c0_i32 = arith.constant 0 : i32
    %c0_i32_0 = arith.constant 0 : i32
    return %arg1, %c0_i32 : i32, i32
  }
  func.func @transform_2(%arg0: i32, %arg1: i32) -> (i32, i32) {
    %c0_i32 = arith.constant 0 : i32
    %c0_i32_0 = arith.constant 0 : i32
    %c0_i32_1 = arith.constant 0 : i32
    return %c0_i32, %c0_i32_0 : i32, i32
  }
  func.func @transform_3(%arg0: i32, %arg1: i32) -> (i32, i32) {
    %c0_i32 = arith.constant 0 : i32
    %c0_i32_0 = arith.constant 0 : i32
    %c0_i32_1 = arith.constant 0 : i32
    return %c0_i32, %c0_i32_0 : i32, i32
  }
  func.func @transform_5(%arg0: i32, %arg1: i32) -> (i32, i32, i32) {
    %c0_i32 = arith.constant 0 : i32
    %c0_i32_0 = arith.constant 0 : i32
    return %arg0, %arg1, %c0_i32 : i32, i32, i32
  }
}

</mosaic_0001>

<bundles_post_ra>
// kernel: tpu_custom_call.1
= control target key start
LH: loop header
LB: loop body
LE: loop exit
PB: predicated region body
PF: predicated region fallthrough
CT: control target
= control target key end

     0   :  { %s2990_s0 = inlined_call_operand.hbm [shape: s32[2,32], index: 0, kind: input, shape index: {}]   ;;  %s2991_s1 = inlined_call_operand.hbm [shape: f32[8,128], index: 1, kind: input, shape index: {}]   ;;  %s2992_s2 = inlined_call_operand.vmem [shape: f32[1,128], index: 2, kind: input, shape index: {}]   ;;  %s2993_s3 = inlined_call_operand.vmem [shape: f32[1,128], index: 3, kind: input, shape index: {}]   ;;  %s2994_s4 = inlined_call_operand.hbm [shape: f32[64,128], index: 4, kind: input, shape index: {}]   ;;  %s2995_s5 = inlined_call_operand.hbm [shape: f32[2,8,128], index: 5, kind: output, shape index: {}]  }
   0x1   :  { %3002 = sst [smem:[#allocation82_spill]] %s2990_s0 }
   0x2   :  { %3003 = sst [smem:[#allocation83_spill]] %s2991_s1 }
   0x3   :  { %3004 = sst [smem:[#allocation84_spill]] %s2992_s2 }
   0x4   :  { %3005 = sst [smem:[#allocation85_spill]] %s2993_s3 }
   0x5   :  { %10 = vsyncpa [#allocation6], 0 }
   0x6   :  { %11 = vsyncpa [#allocation7], 0 }
   0x7   :  { %13 = vsyncpa [#allocation7 + $0x1], 0  ;;  %s2264_s18 = smov 0   ;;  %s2266_s19 = smov 0  }
   0x8   :  { %s2268_s20 = smov 0   ;;  %s2270_s21 = smov 0  }
   0x9   :  { %s2272_s22 = smov 0   ;;  %s2274_s23 = smov 0  }
   0xa LB: > { %s1118_s24 = sadd.s32 4294967295, %s2197_s23   ;;  %s1119_s25 = sadd.s32 4294967294, %s2197_s23   ;;  %s2197_s23 = sphi %s2274_s23, %s19_s23   ;;  %s2193_s22 = sphi %s2272_s22, %s3028_s22   ;;  %s2189_s21 = sphi %s2270_s21, %s3027_s21   ;;  %s2185_s20 = sphi %s2268_s20, %s3026_s20   ;;  %s2181_s19 = sphi %s2266_s19, %s3025_s19   ;;  %s2177_s18 = sphi %s2264_s18, %s3024_s18  }
   0xb   : > { %s31_s26 = sadd.s32 1, %s2193_s22  ;;  %s108_s27 = sadd.s32 1, %s2185_s20 }
   0xc   : > { %p33_p0 = scmp.ge.s32.totalorder %s31_s26, 2  ;;  %p118_p1 = scmp.ne.s32.totalorder %s2185_s20, %s2181_s19 }
   0xd   : > { %p119_p2 = scmp.eq.s32.totalorder %s1118_s24, 1  ;;  %p124_p3 = scmp.ne.s32.totalorder %s2181_s19, %s2177_s18 }
   0xe   : > { %s3030_s26 = smov (%p33_p0, %s31_s26), 0  ;;  %p125_p5 = scmp.eq.s32.totalorder %s1119_s25, 1 }
   0xf   : > { %3006 = sst [smem:[#allocation81_spill]] %s3030_s26  ;;  %p2304_p4 = por %p119_p2, %p118_p1 }
  0x10   : > { %s103_s29 = ssub.s32 %s2193_s22, %s3030_s26  ;;  %p1120_p6 = scmp.ge.s32.totalorder %s2197_s23, 1 }
  0x11   : > { %s3007_s28 = scalar_select %p2304_p4, 1, 0 }
  0x12   : > { %p106_p7 = scmp.eq.s32.totalorder %s103_s29, 0  ;;  %p2311_p8 = por %p125_p5, %p124_p3 }
  0x13   : > { %p132_p9 = scmp.lt.s32.totalorder %s2197_s23, 3  ;;  %p2323_p11 = scmp.eq.s32.totalorder %s1118_s24, 0 }
  0x14   : > { %s3008_s30 = scalar_select %p2311_p8, 1, 0 }
  0x15   : > { %s2317_s6 = scalar_select %p106_p7, %s2185_s20, %s108_s27  }
  0x16   : > { %p2319_p10 = pnand %p1120_p6, %p132_p9  ;;  %s2199_s9 = smov [#allocation5]  }
  0x17   : > { %s3010_s8 = scalar_select %p2323_p11, 1, 0 }
  0x18   : > { %s3009_s7 = scalar_select %p2319_p10, 1, 0 }
  0x19   : > { %p1204_p12 = pneg %p2319_p10  ;;  %s147_s10 = sshll.u32 %s2199_s9, 4  ;;  %s148_s10 = int_to_ptr.vmem [resolvable:$true] %s147_s10 }
  0x1a   : > { %s3012_s1 = sld [smem:[#allocation83_spill]] }
  0x1b   : > { %p2331_p13 = pnand %p2323_p11, %p1204_p12 }
  0x1d   : > { %p1305_p1 = pneg %p2331_p13 }
  0x20   : > { %s1303_s14 = scalar_lea.hbm %s3012_s1, 128 }
  0x21   : > { %p1304_p0 = scmp.ne.s32.totalorder %s3012_s1, %s1303_s14  ;;  %p1310_p5 = scmp.lt.u32.totalorder %s1303_s14, %s3012_s1 }
  0x23   : > { %p1306_p2 = pnand %p1305_p1, %p1304_p0 }
  0x25   : > { %p1307_p3 = pneg %p1306_p2 }
  0x27   : > { %p1312_p6 = pnand %p1310_p5, %p1307_p3 }
  0x29   : > { %1315 = shalt.err (!%p1312_p6)
}
  0x2a   : > { %s1316_s25 = scalar_lea.vmem %s148_s10, 128  ;;  %p1324_p8 = scmp.lt.s32.totalorder %s148_s10, %s148_s10 }
  0x2b   : > { %p1317_p7 = scmp.ne.s32.totalorder %s148_s10, %s1316_s25  ;;  %p1325_p4 = scmp.lt.s32.totalorder %s1316_s25, %s1316_s25 }
  0x2d   : > { %p1319_p9 = pnand %p1317_p7, %p1305_p1  ;;  %p1326_p11 = por %p1325_p4, %p1324_p8 }
  0x2f   : > { %p1320_p12 = pneg %p1319_p9 }
  0x31   : > { %p1327_p10 = pnand %p1326_p11, %p1320_p12 }
  0x33   : > { %1330 = shalt.err (!%p1327_p10)
}
  0x34   : > { %1207 = dma.hbm_to_vmem [thread:$0]  (!%p2331_p13), %s3012_s1, 128, %s148_s10, [#allocation6]  }
  0x35   : > { %p3013_p0 = scmp.ne.s32.totalorder %s3009_s7, 0 }
  0x36   : > { %p3014_p2 = scmp.ne.s32.totalorder (!%p3013_p0), %s3010_s8, 0 }
  0x37   : > { %166 = sbr.rel (%p3013_p0) target bundleno = 1167 (0x48f), region = 32 }
  0x3e   : > { %2164 = dma.done.wait (%p3014_p2), [#allocation6], 128  }
  0x3f   : > { %2166 = vsyncadd (%p3014_p2), [#allocation6], 4294967168  ;;  %s3000_s9 = sand.u32 1, %s2181_s19   ;;  %s1125_s12 = sshll.u32 %s2189_s21, 4 }
  0x40   : > { %s2361_s11 = sshll.u32 %s3000_s9, 3  ;;  %s3015_s0 = sld [smem:[#allocation82_spill]] }
  0x46   : > { %s187_s10 = scalar_lea.hbm %s3015_s0, %s1125_s12  ;;  %s1333_s17 = scalar_lea.hbm %s3015_s0, 32 }
  0x47   : > { %s1331_s7 = scalar_lea.hbm %s187_s10, 16  ;;  %p1334_p8 = scmp.lt.u32.totalorder %s187_s10, %s3015_s0 }
  0x48   : > { %p1332_p4 = scmp.ne.s32.totalorder %s187_s10, %s1331_s7  ;;  %p1335_p10 = scmp.lt.u32.totalorder %s1333_s17, %s1331_s7 }
  0x49   : > { %p1337_p13 = scmp.lt.u32.totalorder %s1331_s7, %s187_s10 }
  0x4a   : > { %p1336_p11 = por %p1335_p10, %p1334_p8 }
  0x4c   : > { %p1338_p1 = por %p1337_p13, %p1336_p11 }
  0x4e   : > { %p1339_p3 = pnand %p1338_p1, %p1332_p4 }
  0x50   : > { %1342 = shalt.err (!%p1339_p3)  }
  0x51   : > { %s2200_s25 = smov [#allocation2]  }
  0x52   : > { %197 = dma.hbm_to_smem %s187_s10, 16, %s2200_s25, [#allocation4 + $0x2] }
  0x53   : > { %2167 = dma.done.wait [#allocation4 + $0x2], 16 }
  0x54   : > { %2168 = vsyncadd [#allocation4 + $0x2], 4294967280 }
  0x55   : > { %200 = sfence }
  0x56   : > { %s201_s29 = sld [smem:[#allocation2]]  ;;  %s2201_s12 = smov [#allocation3]  }
  0x57   : > { %s211_s13 = sshll.u32 %s2201_s12, 4  ;;  %s2373_s14 = sld [smem:[#allocation2 + $0x1]]  ;;  %s2375_s13 = int_to_ptr.vmem [resolvable:$true] %s211_s13 }
  0x58   : > { %s3016_s2 = sld [smem:[#allocation84_spill]]  ;;  %s3017_s3 = sld [smem:[#allocation85_spill]] }
  0x59   : > { %s2202_s10 = smov [#allocation3 + $0x1]   ;;  %s2387_s24 = sld [smem:[#allocation2 + $0x2]] }
  0x5a   : > { %s226_s8 = sshll.u32 %s2202_s10, 4  ;;  %s2203_s25 = smov [#allocation3 + $0x2]   ;;  %s2389_s8 = int_to_ptr.vmem [resolvable:$true] %s226_s8 }
  0x5b   : > { %s241_s12 = sshll.u32 %s2203_s25, 4  ;;  %s2391_s9 = sld [smem:[#allocation2 + $0x3]]  ;;  %s2393_s12 = int_to_ptr.vmem [resolvable:$true] %s241_s12 }
  0x5c   : > { %s1126_s27 = sshll.u32 %s201_s29, 4 }
  0x5d   : > { %s203_s0 = scalar_lea.hbm %s2994_s4, %s1126_s27  ;;  %s1128_s16 = sshll.u32 %s2373_s14, 4 }
  0x5e   : > { %v2380_v0 = vld [vmem:[%s3016_s2] ss:$0 sm:$0xff]  ;;  %s1343_s17 = scalar_lea.hbm %s203_s0, 16  ;;  %s2402_s2 = scalar_lea.hbm %s2994_s4, 1024 }
  0x5f   : > { %v2385_v1 = vld [vmem:[%s3017_s3] ss:$0 sm:$0xff]  ;;  %p1344_p5 = scmp.ne.s32.totalorder %s203_s0, %s1343_s17  ;;  %p1346_p6 = scmp.lt.u32.totalorder %s203_s0, %s2994_s4 }
  0x60   : > { %p1347_p7 = scmp.lt.u32.totalorder %s2402_s2, %s1343_s17  ;;  %p1349_p12 = scmp.lt.u32.totalorder %s1343_s17, %s203_s0 }
  0x62   : > { %p1348_p9 = por %p1347_p7, %p1346_p6 }
  0x64   : > { %p1350_p0 = por %p1349_p12, %p1348_p9 }
  0x66   : > { %p1351_p2 = pnand %p1350_p0, %p1344_p5 }
  0x68   : > { %1354 = shalt.err (!%p1351_p2)  }
  0x69   : > { %s1355_s27 = scalar_lea.vmem %s2375_s13, 16  ;;  %s2411_s1 = scalar_lea.vmem %s2375_s13, 1024 }
  0x6a   : > { %p1356_p4 = scmp.ne.s32.totalorder %s2375_s13, %s1355_s27  ;;  %p1360_p8 = scmp.lt.s32.totalorder %s2375_s13, %s2375_s13 }
  0x6b   : > { %p1361_p10 = scmp.lt.s32.totalorder %s2411_s1, %s1355_s27 }
  0x6d   : > { %p1362_p11 = por %p1361_p10, %p1360_p8 }
  0x6f   : > { %p1363_p13 = pnand %p1362_p11, %p1356_p4 }
  0x71   : > { %1366 = shalt.err (!%p1363_p13)  }
  0x72   : > { %214 = dma.hbm_to_vmem [thread:$0]  %s203_s0, 16, %s2375_s13, [#allocation4] }
  0x73   : > { %s217_s29 = scalar_lea.hbm %s2994_s4, %s1128_s16  ;;  %s1130_s14 = sshll.u32 %s2387_s24, 4 }
  0x74   : > { %s1367_s25 = scalar_lea.hbm %s217_s29, 16  ;;  %p1370_p3 = scmp.lt.u32.totalorder %s217_s29, %s2994_s4 }
  0x75   : > { %p1368_p1 = scmp.ne.s32.totalorder %s217_s29, %s1367_s25  ;;  %p1371_p5 = scmp.lt.u32.totalorder %s2402_s2, %s1367_s25 }
  0x76   : > { %p1373_p7 = scmp.lt.u32.totalorder %s1367_s25, %s217_s29 }
  0x77   : > { %p1372_p6 = por %p1371_p5, %p1370_p3 }
  0x79   : > { %p1374_p9 = por %p1373_p7, %p1372_p6 }
  0x7b   : > { %p1375_p12 = pnand %p1374_p9, %p1368_p1 }
  0x7d   : > { %1378 = shalt.err (!%p1375_p12)  }
  0x7e   : > { %s1379_s0 = scalar_lea.vmem %s2389_s8, 16  ;;  %p1384_p2 = scmp.lt.s32.totalorder %s2389_s8, %s2375_s13 }
  0x7f   : > { %p1380_p0 = scmp.ne.s32.totalorder %s2389_s8, %s1379_s0  ;;  %p1385_p4 = scmp.lt.s32.totalorder %s2411_s1, %s1379_s0 }
  0x81   : > { %p1386_p8 = por %p1385_p4, %p1384_p2 }
  0x83   : > { %p1387_p10 = pnand %p1386_p8, %p1380_p0 }
  0x85   : > { %1390 = shalt.err (!%p1387_p10)  }
  0x86   : > { %229 = dma.hbm_to_vmem [thread:$0]  %s217_s29, 16, %s2389_s8, [#allocation4] }
  0x87   : > { %s232_s17 = scalar_lea.hbm %s2994_s4, %s1130_s14  ;;  %s1132_s10 = sshll.u32 %s2391_s9, 4 }
  0x88   : > { %s1391_s27 = scalar_lea.hbm %s232_s17, 16  ;;  %p1394_p13 = scmp.lt.u32.totalorder %s232_s17, %s2994_s4 }
  0x89   : > { %p1392_p11 = scmp.ne.s32.totalorder %s232_s17, %s1391_s27  ;;  %p1395_p1 = scmp.lt.u32.totalorder %s2402_s2, %s1391_s27 }
  0x8a   : > { %p1397_p5 = scmp.lt.u32.totalorder %s1391_s27, %s232_s17 }
  0x8b   : > { %p1396_p3 = por %p1395_p1, %p1394_p13 }
  0x8d   : > { %p1398_p6 = por %p1397_p5, %p1396_p3 }
  0x8f   : > { %p1399_p7 = pnand %p1398_p6, %p1392_p11 }
  0x91   : > { %1402 = shalt.err (!%p1399_p7)  }
  0x92   : > { %s1403_s8 = scalar_lea.vmem %s2393_s12, 16  ;;  %p1408_p12 = scmp.lt.s32.totalorder %s2393_s12, %s2375_s13 }
  0x93   : > { %p1404_p9 = scmp.ne.s32.totalorder %s2393_s12, %s1403_s8  ;;  %p1409_p0 = scmp.lt.s32.totalorder %s2411_s1, %s1403_s8 }
  0x95   : > { %p1410_p2 = por %p1409_p0, %p1408_p12 }
  0x97   : > { %p1411_p4 = pnand %p1410_p2, %p1404_p9 }
  0x99   : > { %1414 = shalt.err (!%p1411_p4)  }
  0x9a   : > { %244 = dma.hbm_to_vmem [thread:$0]  %s232_s17, 16, %s2393_s12, [#allocation4] }
  0x9b   : > { %s247_s14 = scalar_lea.hbm %s2994_s4, %s1132_s10  ;;  %s2204_s25 = smov [#allocation3 + $0x3]  }
  0x9c   : > { %s256_s15 = sshll.u32 %s2204_s25, 4  ;;  %s2448_s7 = sld [smem:[#allocation2 + $0x4]]  ;;  %s257_s15 = int_to_ptr.vmem [resolvable:$true] %s256_s15 }
  0x9d   : > { %s1415_s0 = scalar_lea.hbm %s247_s14, 16  ;;  %p1418_p10 = scmp.lt.u32.totalorder %s247_s14, %s2994_s4 }
  0x9e   : > { %p1416_p8 = scmp.ne.s32.totalorder %s247_s14, %s1415_s0  ;;  %p1419_p11 = scmp.lt.u32.totalorder %s2402_s2, %s1415_s0 }
  0x9f   : > { %p1421_p1 = scmp.lt.u32.totalorder %s1415_s0, %s247_s14 }
  0xa0   : > { %p1420_p13 = por %p1419_p11, %p1418_p10 }
  0xa2   : > { %p1422_p3 = por %p1421_p1, %p1420_p13 }
  0xa4   : > { %p1423_p5 = pnand %p1422_p3, %p1416_p8 }
  0xa6   : > { %1426 = shalt.err (!%p1423_p5)  }
  0xa7   : > { %s1427_s12 = scalar_lea.vmem %s257_s15, 16  ;;  %p1432_p7 = scmp.lt.s32.totalorder %s257_s15, %s2375_s13 }
  0xa8   : > { %p1428_p6 = scmp.ne.s32.totalorder %s257_s15, %s1427_s12  ;;  %p1433_p9 = scmp.lt.s32.totalorder %s2411_s1, %s1427_s12 }
  0xaa   : > { %p1434_p12 = por %p1433_p9, %p1432_p7 }
  0xac   : > { %p1435_p0 = pnand %p1434_p12, %p1428_p6 }
  0xae   : > { %1438 = shalt.err (!%p1435_p0)  }
  0xaf   : > { %259 = dma.hbm_to_vmem [thread:$0]  %s247_s14, 16, %s257_s15, [#allocation4] }
  0xb0   : > { %s2205_s17 = smov [#allocation3 + $0x4]   ;;  %s2456_s27 = sld [smem:[#allocation2 + $0x5]] }
  0xb1   : > { %s271_s10 = sshll.u32 %s2205_s17, 4  ;;  %s2206_s3 = smov [#allocation3 + $0x5]   ;;  %s272_s10 = int_to_ptr.vmem [resolvable:$true] %s271_s10 }
  0xb2   : > { %s286_s26 = sshll.u32 %s2206_s3, 4  ;;  %s2458_s8 = sld [smem:[#allocation2 + $0x6]]  ;;  %s2461_s26 = int_to_ptr.vmem [resolvable:$true] %s286_s26 }
  0xb3   : > { %s1134_s9 = sshll.u32 %s2448_s7, 4 }
  0xb4   : > { %s262_s0 = scalar_lea.hbm %s2994_s4, %s1134_s9 }
  0xb5   : > { %s1439_s24 = scalar_lea.hbm %s262_s0, 16  ;;  %p1442_p4 = scmp.lt.u32.totalorder %s262_s0, %s2994_s4 }
  0xb6   : > { %p1440_p2 = scmp.ne.s32.totalorder %s262_s0, %s1439_s24  ;;  %p1443_p8 = scmp.lt.u32.totalorder %s2402_s2, %s1439_s24 }
  0xb7   : > { %p1445_p11 = scmp.lt.u32.totalorder %s1439_s24, %s262_s0 }
  0xb8   : > { %p1444_p10 = por %p1443_p8, %p1442_p4 }
  0xba   : > { %p1446_p13 = por %p1445_p11, %p1444_p10 }
  0xbc   : > { %p1447_p1 = pnand %p1446_p13, %p1440_p2 }
  0xbe   : > { %1450 = shalt.err (!%p1447_p1)  }
  0xbf   : > { %s1451_s16 = scalar_lea.vmem %s272_s10, 16  ;;  %p1456_p5 = scmp.lt.s32.totalorder %s272_s10, %s2375_s13 }
  0xc0   : > { %p1452_p3 = scmp.ne.s32.totalorder %s272_s10, %s1451_s16  ;;  %p1457_p6 = scmp.lt.s32.totalorder %s2411_s1, %s1451_s16 }
  0xc2   : > { %p1458_p7 = por %p1457_p6, %p1456_p5 }
  0xc4   : > { %p1459_p9 = pnand %p1458_p7, %p1452_p3 }
  0xc6   : > { %1462 = shalt.err (!%p1459_p9)  }
  0xc7   : > { %274 = dma.hbm_to_vmem [thread:$0]  %s262_s0, 16, %s272_s10, [#allocation4] }
  0xc8   : > { %s1136_s7 = sshll.u32 %s2456_s27, 4  ;;  %s2207_s12 = smov [#allocation3 + $0x6]  }
  0xc9   : > { %s301_s17 = sshll.u32 %s2207_s12, 4  ;;  %s277_s29 = scalar_lea.hbm %s2994_s4, %s1136_s7  ;;  %s2476_s17 = int_to_ptr.vmem [resolvable:$true] %s301_s17 }
  0xca   : > { %s1463_s25 = scalar_lea.hbm %s277_s29, 16  ;;  %p1466_p0 = scmp.lt.u32.totalorder %s277_s29, %s2994_s4 }
  0xcb   : > { %p1464_p12 = scmp.ne.s32.totalorder %s277_s29, %s1463_s25  ;;  %p1467_p2 = scmp.lt.u32.totalorder %s2402_s2, %s1463_s25 }
  0xcc   : > { %p1469_p8 = scmp.lt.u32.totalorder %s1463_s25, %s277_s29 }
  0xcd   : > { %p1468_p4 = por %p1467_p2, %p1466_p0 }
  0xcf   : > { %p1470_p10 = por %p1469_p8, %p1468_p4 }
  0xd1   : > { %p1471_p11 = pnand %p1470_p10, %p1464_p12 }
  0xd3   : > { %1474 = shalt.err (!%p1471_p11)  }
  0xd4   : > { %s1475_s10 = scalar_lea.vmem %s2461_s26, 16  ;;  %p1480_p1 = scmp.lt.s32.totalorder %s2461_s26, %s2375_s13 }
  0xd5   : > { %p1476_p13 = scmp.ne.s32.totalorder %s2461_s26, %s1475_s10  ;;  %p1481_p3 = scmp.lt.s32.totalorder %s2411_s1, %s1475_s10 }
  0xd7   : > { %p1482_p5 = por %p1481_p3, %p1480_p1 }
  0xd9   : > { %p1483_p6 = pnand %p1482_p5, %p1476_p13 }
  0xdb   : > { %1486 = shalt.err (!%p1483_p6)  }
  0xdc   : > { %289 = dma.hbm_to_vmem [thread:$0]  %s277_s29, 16, %s2461_s26, [#allocation4] }
  0xdd   : > { %s1138_s27 = sshll.u32 %s2458_s8, 4  ;;  %s2489_s0 = sld [smem:[#allocation2 + $0x7]] }
  0xde   : > { %s292_s7 = scalar_lea.hbm %s2994_s4, %s1138_s27 }
  0xdf   : > { %s1487_s12 = scalar_lea.hbm %s292_s7, 16  ;;  %p1490_p9 = scmp.lt.u32.totalorder %s292_s7, %s2994_s4 }
  0xe0   : > { %p1488_p7 = scmp.ne.s32.totalorder %s292_s7, %s1487_s12  ;;  %p1491_p12 = scmp.lt.u32.totalorder %s2402_s2, %s1487_s12 }
  0xe1   : > { %p1493_p2 = scmp.lt.u32.totalorder %s1487_s12, %s292_s7 }
  0xe2   : > { %p1492_p0 = por %p1491_p12, %p1490_p9 }
  0xe4   : > { %p1494_p4 = por %p1493_p2, %p1492_p0 }
  0xe6   : > { %p1495_p8 = pnand %p1494_p4, %p1488_p7 }
  0xe8   : > { %1498 = shalt.err (!%p1495_p8)  }
  0xe9   : > { %s1499_s26 = scalar_lea.vmem %s2476_s17, 16  ;;  %p1504_p11 = scmp.lt.s32.totalorder %s2476_s17, %s2375_s13 }
  0xea   : > { %p1500_p10 = scmp.ne.s32.totalorder %s2476_s17, %s1499_s26  ;;  %p1505_p13 = scmp.lt.s32.totalorder %s2411_s1, %s1499_s26 }
  0xec   : > { %p1506_p1 = por %p1505_p13, %p1504_p11 }
  0xee   : > { %p1507_p3 = pnand %p1506_p1, %p1500_p10 }
  0xf0   : > { %1510 = shalt.err (!%p1507_p3)  }
  0xf1   : > { %304 = dma.hbm_to_vmem [thread:$0]  %s292_s7, 16, %s2476_s17, [#allocation4] }
  0xf2   : > { %s2208_s8 = smov [#allocation3 + $0x7]   ;;  %s2504_s25 = sld [smem:[#allocation2 + $0x8]] }
  0xf3   : > { %s316_s29 = sshll.u32 %s2208_s8, 4  ;;  %s2209_s24 = smov [#allocation3 + $0x8]   ;;  %s317_s29 = int_to_ptr.vmem [resolvable:$true] %s316_s29 }
  0xf4   : > { %s331_s14 = sshll.u32 %s2209_s24, 4  ;;  %s2506_s10 = sld [smem:[#allocation2 + $0x9]]  ;;  %s2509_s14 = int_to_ptr.vmem [resolvable:$true] %s331_s14 }
  0xf5   : > { %s1140_s27 = sshll.u32 %s2489_s0, 4 }
  0xf6   : > { %s307_s12 = scalar_lea.hbm %s2994_s4, %s1140_s27 }
  0xf7   : > { %s1511_s3 = scalar_lea.hbm %s307_s12, 16  ;;  %p1514_p6 = scmp.lt.u32.totalorder %s307_s12, %s2994_s4 }
  0xf8   : > { %p1512_p5 = scmp.ne.s32.totalorder %s307_s12, %s1511_s3  ;;  %p1515_p7 = scmp.lt.u32.totalorder %s2402_s2, %s1511_s3 }
  0xf9   : > { %p1517_p12 = scmp.lt.u32.totalorder %s1511_s3, %s307_s12 }
  0xfa   : > { %p1516_p9 = por %p1515_p7, %p1514_p6 }
  0xfc   : > { %p1518_p0 = por %p1517_p12, %p1516_p9 }
  0xfe   : > { %p1519_p2 = pnand %p1518_p0, %p1512_p5 }
 0x100   : > { %1522 = shalt.err (!%p1519_p2)  }
 0x101   : > { %s1523_s7 = scalar_lea.vmem %s317_s29, 16  ;;  %p1528_p8 = scmp.lt.s32.totalorder %s317_s29, %s2375_s13 }
 0x102   : > { %p1524_p4 = scmp.ne.s32.totalorder %s317_s29, %s1523_s7  ;;  %p1529_p10 = scmp.lt.s32.totalorder %s2411_s1, %s1523_s7 }
 0x104   : > { %p1530_p11 = por %p1529_p10, %p1528_p8 }
 0x106   : > { %p1531_p13 = pnand %p1530_p11, %p1524_p4 }
 0x108   : > { %1534 = shalt.err (!%p1531_p13)  }
 0x109   : > { %319 = dma.hbm_to_vmem [thread:$0]  %s307_s12, 16, %s317_s29, [#allocation4] }
 0x10a   : > { %s1142_s0 = sshll.u32 %s2504_s25, 4  ;;  %s2210_s26 = smov [#allocation3 + $0x9]  }
 0x10b   : > { %s346_s8 = sshll.u32 %s2210_s26, 4  ;;  %s322_s15 = scalar_lea.hbm %s2994_s4, %s1142_s0  ;;  %s2524_s8 = int_to_ptr.vmem [resolvable:$true] %s346_s8 }
 0x10c   : > { %s1535_s16 = scalar_lea.hbm %s322_s15, 16  ;;  %p1538_p3 = scmp.lt.u32.totalorder %s322_s15, %s2994_s4 }
 0x10d   : > { %p1536_p1 = scmp.ne.s32.totalorder %s322_s15, %s1535_s16  ;;  %p1539_p5 = scmp.lt.u32.totalorder %s2402_s2, %s1535_s16 }
 0x10e   : > { %p1541_p7 = scmp.lt.u32.totalorder %s1535_s16, %s322_s15 }
 0x10f   : > { %p1540_p6 = por %p1539_p5, %p1538_p3 }
 0x111   : > { %p1542_p9 = por %p1541_p7, %p1540_p6 }
 0x113   : > { %p1543_p12 = pnand %p1542_p9, %p1536_p1 }
 0x115   : > { %1546 = shalt.err (!%p1543_p12)  }
 0x116   : > { %s1547_s29 = scalar_lea.vmem %s2509_s14, 16  ;;  %p1552_p2 = scmp.lt.s32.totalorder %s2509_s14, %s2375_s13 }
 0x117   : > { %p1548_p0 = scmp.ne.s32.totalorder %s2509_s14, %s1547_s29  ;;  %p1553_p4 = scmp.lt.s32.totalorder %s2411_s1, %s1547_s29 }
 0x119   : > { %p1554_p8 = por %p1553_p4, %p1552_p2 }
 0x11b   : > { %p1555_p10 = pnand %p1554_p8, %p1548_p0 }
 0x11d   : > { %1558 = shalt.err (!%p1555_p10)  }
 0x11e   : > { %334 = dma.hbm_to_vmem [thread:$0]  %s322_s15, 16, %s2509_s14, [#allocation4] }
 0x11f   : > { %s1144_s25 = sshll.u32 %s2506_s10, 4  ;;  %s2537_s12 = sld [smem:[#allocation2 + $0xa]] }
 0x120   : > { %s337_s0 = scalar_lea.hbm %s2994_s4, %s1144_s25 }
 0x121   : > { %s1559_s26 = scalar_lea.hbm %s337_s0, 16  ;;  %p1562_p13 = scmp.lt.u32.totalorder %s337_s0, %s2994_s4 }
 0x122   : > { %p1560_p11 = scmp.ne.s32.totalorder %s337_s0, %s1559_s26  ;;  %p1563_p1 = scmp.lt.u32.totalorder %s2402_s2, %s1559_s26 }
 0x123   : > { %p1565_p5 = scmp.lt.u32.totalorder %s1559_s26, %s337_s0 }
 0x124   : > { %p1564_p3 = por %p1563_p1, %p1562_p13 }
 0x126   : > { %p1566_p6 = por %p1565_p5, %p1564_p3 }
 0x128   : > { %p1567_p7 = pnand %p1566_p6, %p1560_p11 }
 0x12a   : > { %1570 = shalt.err (!%p1567_p7)  }
 0x12b   : > { %s1571_s14 = scalar_lea.vmem %s2524_s8, 16  ;;  %p1576_p12 = scmp.lt.s32.totalorder %s2524_s8, %s2375_s13 }
 0x12c   : > { %p1572_p9 = scmp.ne.s32.totalorder %s2524_s8, %s1571_s14  ;;  %p1577_p0 = scmp.lt.s32.totalorder %s2411_s1, %s1571_s14 }
 0x12e   : > { %p1578_p2 = por %p1577_p0, %p1576_p12 }
 0x130   : > { %p1579_p4 = pnand %p1578_p2, %p1572_p9 }
 0x132   : > { %1582 = shalt.err (!%p1579_p4)  }
 0x133   : > { %349 = dma.hbm_to_vmem [thread:$0]  %s337_s0, 16, %s2524_s8, [#allocation4] }
 0x134   : > { %s2211_s10 = smov [#allocation3 + $0xa]   ;;  %s2552_s16 = sld [smem:[#allocation2 + $0xb]] }
 0x135   : > { %s361_s15 = sshll.u32 %s2211_s10, 4  ;;  %s2212_s3 = smov [#allocation3 + $0xb]   ;;  %s362_s15 = int_to_ptr.vmem [resolvable:$true] %s361_s15 }
 0x136   : > { %s376_s9 = sshll.u32 %s2212_s3, 4  ;;  %s2554_s29 = sld [smem:[#allocation2 + $0xc]]  ;;  %s2557_s9 = int_to_ptr.vmem [resolvable:$true] %s376_s9 }
 0x137   : > { %s1146_s25 = sshll.u32 %s2537_s12, 4 }
 0x138   : > { %s352_s26 = scalar_lea.hbm %s2994_s4, %s1146_s25 }
 0x139   : > { %s1583_s24 = scalar_lea.hbm %s352_s26, 16  ;;  %p1586_p10 = scmp.lt.u32.totalorder %s352_s26, %s2994_s4 }
 0x13a   : > { %p1584_p8 = scmp.ne.s32.totalorder %s352_s26, %s1583_s24  ;;  %p1587_p11 = scmp.lt.u32.totalorder %s2402_s2, %s1583_s24 }
 0x13b   : > { %p1589_p1 = scmp.lt.u32.totalorder %s1583_s24, %s352_s26 }
 0x13c   : > { %p1588_p13 = por %p1587_p11, %p1586_p10 }
 0x13e   : > { %p1590_p3 = por %p1589_p1, %p1588_p13 }
 0x140   : > { %p1591_p5 = pnand %p1590_p3, %p1584_p8 }
 0x142   : > { %1594 = shalt.err (!%p1591_p5)  }
 0x143   : > { %s1595_s0 = scalar_lea.vmem %s362_s15, 16  ;;  %p1600_p7 = scmp.lt.s32.totalorder %s362_s15, %s2375_s13 }
 0x144   : > { %p1596_p6 = scmp.ne.s32.totalorder %s362_s15, %s1595_s0  ;;  %p1601_p9 = scmp.lt.s32.totalorder %s2411_s1, %s1595_s0 }
 0x146   : > { %p1602_p12 = por %p1601_p9, %p1600_p7 }
 0x148   : > { %p1603_p0 = pnand %p1602_p12, %p1596_p6 }
 0x14a   : > { %1606 = shalt.err (!%p1603_p0)  }
 0x14b   : > { %364 = dma.hbm_to_vmem [thread:$0]  %s352_s26, 16, %s362_s15, [#allocation4] }
 0x14c   : > { %s1148_s12 = sshll.u32 %s2552_s16, 4  ;;  %s2213_s14 = smov [#allocation3 + $0xc]  }
 0x14d   : > { %s391_s10 = sshll.u32 %s2213_s14, 4  ;;  %s367_s17 = scalar_lea.hbm %s2994_s4, %s1148_s12  ;;  %s2572_s10 = int_to_ptr.vmem [resolvable:$true] %s391_s10 }
 0x14e   : > { %s1607_s7 = scalar_lea.hbm %s367_s17, 16  ;;  %p1610_p4 = scmp.lt.u32.totalorder %s367_s17, %s2994_s4 }
 0x14f   : > { %p1608_p2 = scmp.ne.s32.totalorder %s367_s17, %s1607_s7  ;;  %p1611_p8 = scmp.lt.u32.totalorder %s2402_s2, %s1607_s7 }
 0x150   : > { %p1613_p11 = scmp.lt.u32.totalorder %s1607_s7, %s367_s17 }
 0x151   : > { %p1612_p10 = por %p1611_p8, %p1610_p4 }
 0x153   : > { %p1614_p13 = por %p1613_p11, %p1612_p10 }
 0x155   : > { %p1615_p1 = pnand %p1614_p13, %p1608_p2 }
 0x157   : > { %1618 = shalt.err (!%p1615_p1)  }
 0x158   : > { %s1619_s15 = scalar_lea.vmem %s2557_s9, 16  ;;  %p1624_p5 = scmp.lt.s32.totalorder %s2557_s9, %s2375_s13 }
 0x159   : > { %p1620_p3 = scmp.ne.s32.totalorder %s2557_s9, %s1619_s15  ;;  %p1625_p6 = scmp.lt.s32.totalorder %s2411_s1, %s1619_s15 }
 0x15b   : > { %p1626_p7 = por %p1625_p6, %p1624_p5 }
 0x15d   : > { %p1627_p9 = pnand %p1626_p7, %p1620_p3 }
 0x15f   : > { %1630 = shalt.err (!%p1627_p9)  }
 0x160   : > { %379 = dma.hbm_to_vmem [thread:$0]  %s367_s17, 16, %s2557_s9, [#allocation4] }
 0x161   : > { %s1150_s16 = sshll.u32 %s2554_s29, 4  ;;  %s2585_s26 = sld [smem:[#allocation2 + $0xd]] }
 0x162   : > { %s382_s12 = scalar_lea.hbm %s2994_s4, %s1150_s16 }
 0x163   : > { %s1631_s14 = scalar_lea.hbm %s382_s12, 16  ;;  %p1634_p0 = scmp.lt.u32.totalorder %s382_s12, %s2994_s4 }
 0x164   : > { %p1632_p12 = scmp.ne.s32.totalorder %s382_s12, %s1631_s14  ;;  %p1635_p2 = scmp.lt.u32.totalorder %s2402_s2, %s1631_s14 }
 0x165   : > { %p1637_p8 = scmp.lt.u32.totalorder %s1631_s14, %s382_s12 }
 0x166   : > { %p1636_p4 = por %p1635_p2, %p1634_p0 }
 0x168   : > { %p1638_p10 = por %p1637_p8, %p1636_p4 }
 0x16a   : > { %p1639_p11 = pnand %p1638_p10, %p1632_p12 }
 0x16c   : > { %1642 = shalt.err (!%p1639_p11)  }
 0x16d   : > { %s1643_s9 = scalar_lea.vmem %s2572_s10, 16  ;;  %p1648_p1 = scmp.lt.s32.totalorder %s2572_s10, %s2375_s13 }
 0x16e   : > { %p1644_p13 = scmp.ne.s32.totalorder %s2572_s10, %s1643_s9  ;;  %p1649_p3 = scmp.lt.s32.totalorder %s2411_s1, %s1643_s9 }
 0x170   : > { %p1650_p5 = por %p1649_p3, %p1648_p1 }
 0x172   : > { %p1651_p6 = pnand %p1650_p5, %p1644_p13 }
 0x174   : > { %1654 = shalt.err (!%p1651_p6)  }
 0x175   : > { %394 = dma.hbm_to_vmem [thread:$0]  %s382_s12, 16, %s2572_s10, [#allocation4] }
 0x176   : > { %s2214_s29 = smov [#allocation3 + $0xd]   ;;  %s2600_s7 = sld [smem:[#allocation2 + $0xe]] }
 0x177   : > { %s406_s17 = sshll.u32 %s2214_s29, 4  ;;  %s2215_s24 = smov [#allocation3 + $0xe]   ;;  %s407_s17 = int_to_ptr.vmem [resolvable:$true] %s406_s17 }
 0x178   : > { %s421_s27 = sshll.u32 %s2215_s24, 4  ;;  %s2602_s15 = sld [smem:[#allocation2 + $0xf]]  ;;  %s2605_s27 = int_to_ptr.vmem [resolvable:$true] %s421_s27 }
 0x179   : > { %s1152_s16 = sshll.u32 %s2585_s26, 4 }
 0x17a   : > { %s397_s14 = scalar_lea.hbm %s2994_s4, %s1152_s16 }
 0x17b   : > { %s1655_s3 = scalar_lea.hbm %s397_s14, 16  ;;  %p1658_p9 = scmp.lt.u32.totalorder %s397_s14, %s2994_s4 }
 0x17c   : > { %p1656_p7 = scmp.ne.s32.totalorder %s397_s14, %s1655_s3  ;;  %p1659_p12 = scmp.lt.u32.totalorder %s2402_s2, %s1655_s3 }
 0x17d   : > { %p1661_p2 = scmp.lt.u32.totalorder %s1655_s3, %s397_s14 }
 0x17e   : > { %p1660_p0 = por %p1659_p12, %p1658_p9 }
 0x180   : > { %p1662_p4 = por %p1661_p2, %p1660_p0 }
 0x182   : > { %p1663_p8 = pnand %p1662_p4, %p1656_p7 }
 0x184   : > { %1666 = shalt.err (!%p1663_p8)  }
 0x185   : > { %s1667_s12 = scalar_lea.vmem %s407_s17, 16  ;;  %p1672_p11 = scmp.lt.s32.totalorder %s407_s17, %s2375_s13 }
 0x186   : > { %p1668_p10 = scmp.ne.s32.totalorder %s407_s17, %s1667_s12  ;;  %p1673_p13 = scmp.lt.s32.totalorder %s2411_s1, %s1667_s12 }
 0x188   : > { %p1674_p1 = por %p1673_p13, %p1672_p11 }
 0x18a   : > { %p1675_p3 = pnand %p1674_p1, %p1668_p10 }
 0x18c   : > { %1678 = shalt.err (!%p1675_p3)  }
 0x18d   : > { %409 = dma.hbm_to_vmem [thread:$0]  %s397_s14, 16, %s407_s17, [#allocation4] }
 0x18e   : > { %s1154_s26 = sshll.u32 %s2600_s7, 4  ;;  %s2216_s9 = smov [#allocation3 + $0xf]  }
 0x18f   : > { %s436_s29 = sshll.u32 %s2216_s9, 4  ;;  %s412_s8 = scalar_lea.hbm %s2994_s4, %s1154_s26  ;;  %s2620_s29 = int_to_ptr.vmem [resolvable:$true] %s436_s29 }
 0x190   : > { %s1679_s0 = scalar_lea.hbm %s412_s8, 16  ;;  %p1682_p6 = scmp.lt.u32.totalorder %s412_s8, %s2994_s4 }
 0x191   : > { %p1680_p5 = scmp.ne.s32.totalorder %s412_s8, %s1679_s0  ;;  %p1683_p7 = scmp.lt.u32.totalorder %s2402_s2, %s1679_s0 }
 0x192   : > { %p1685_p12 = scmp.lt.u32.totalorder %s1679_s0, %s412_s8 }
 0x193   : > { %p1684_p9 = por %p1683_p7, %p1682_p6 }
 0x195   : > { %p1686_p0 = por %p1685_p12, %p1684_p9 }
 0x197   : > { %p1687_p2 = pnand %p1686_p0, %p1680_p5 }
 0x199   : > { %1690 = shalt.err (!%p1687_p2)  }
 0x19a   : > { %s1691_s17 = scalar_lea.vmem %s2605_s27, 16  ;;  %p1696_p8 = scmp.lt.s32.totalorder %s2605_s27, %s2375_s13 }
 0x19b   : > { %p1692_p4 = scmp.ne.s32.totalorder %s2605_s27, %s1691_s17  ;;  %p1697_p10 = scmp.lt.s32.totalorder %s2411_s1, %s1691_s17 }
 0x19d   : > { %p1698_p11 = por %p1697_p10, %p1696_p8 }
 0x19f   : > { %p1699_p13 = pnand %p1698_p11, %p1692_p4 }
 0x1a1   : > { %1702 = shalt.err (!%p1699_p13)  }
 0x1a2   : > { %424 = dma.hbm_to_vmem [thread:$0]  %s412_s8, 16, %s2605_s27, [#allocation4] }
 0x1a3   : > { %s1156_s7 = sshll.u32 %s2602_s15, 4  ;;  %s2633_s14 = sld [smem:[#allocation2 + $0x10]] }
 0x1a4   : > { %s427_s26 = scalar_lea.hbm %s2994_s4, %s1156_s7 }
 0x1a5   : > { %s1703_s9 = scalar_lea.hbm %s427_s26, 16  ;;  %p1706_p3 = scmp.lt.u32.totalorder %s427_s26, %s2994_s4 }
 0x1a6   : > { %p1704_p1 = scmp.ne.s32.totalorder %s427_s26, %s1703_s9  ;;  %p1707_p5 = scmp.lt.u32.totalorder %s2402_s2, %s1703_s9 }
 0x1a7   : > { %p1709_p7 = scmp.lt.u32.totalorder %s1703_s9, %s427_s26 }
 0x1a8   : > { %p1708_p6 = por %p1707_p5, %p1706_p3 }
 0x1aa   : > { %p1710_p9 = por %p1709_p7, %p1708_p6 }
 0x1ac   : > { %p1711_p12 = pnand %p1710_p9, %p1704_p1 }
 0x1ae   : > { %1714 = shalt.err (!%p1711_p12)  }
 0x1af   : > { %s1715_s27 = scalar_lea.vmem %s2620_s29, 16  ;;  %p1720_p2 = scmp.lt.s32.totalorder %s2620_s29, %s2375_s13 }
 0x1b0   : > { %p1716_p0 = scmp.ne.s32.totalorder %s2620_s29, %s1715_s27  ;;  %p1721_p4 = scmp.lt.s32.totalorder %s2411_s1, %s1715_s27 }
 0x1b2   : > { %p1722_p8 = por %p1721_p4, %p1720_p2 }
 0x1b4   : > { %p1723_p10 = pnand %p1722_p8, %p1716_p0 }
 0x1b6   : > { %1726 = shalt.err (!%p1723_p10)  }
 0x1b7   : > { %439 = dma.hbm_to_vmem [thread:$0]  %s427_s26, 16, %s2620_s29, [#allocation4] }
 0x1b8   : > { %s2217_s15 = smov [#allocation3 + $0x10]   ;;  %s2648_s0 = sld [smem:[#allocation2 + $0x11]] }
 0x1b9   : > { %s451_s8 = sshll.u32 %s2217_s15, 4  ;;  %s2218_s3 = smov [#allocation3 + $0x11]   ;;  %s452_s8 = int_to_ptr.vmem [resolvable:$true] %s451_s8 }
 0x1ba   : > { %s466_s25 = sshll.u32 %s2218_s3, 4  ;;  %s2650_s17 = sld [smem:[#allocation2 + $0x12]]  ;;  %s2653_s25 = int_to_ptr.vmem [resolvable:$true] %s466_s25 }
 0x1bb   : > { %s1158_s7 = sshll.u32 %s2633_s14, 4 }
 0x1bc   : > { %s442_s9 = scalar_lea.hbm %s2994_s4, %s1158_s7 }
 0x1bd   : > { %s1727_s24 = scalar_lea.hbm %s442_s9, 16  ;;  %p1730_p13 = scmp.lt.u32.totalorder %s442_s9, %s2994_s4 }
 0x1be   : > { %p1728_p11 = scmp.ne.s32.totalorder %s442_s9, %s1727_s24  ;;  %p1731_p1 = scmp.lt.u32.totalorder %s2402_s2, %s1727_s24 }
 0x1bf   : > { %p1733_p5 = scmp.lt.u32.totalorder %s1727_s24, %s442_s9 }
 0x1c0   : > { %p1732_p3 = por %p1731_p1, %p1730_p13 }
 0x1c2   : > { %p1734_p6 = por %p1733_p5, %p1732_p3 }
 0x1c4   : > { %p1735_p7 = pnand %p1734_p6, %p1728_p11 }
 0x1c6   : > { %1738 = shalt.err (!%p1735_p7)  }
 0x1c7   : > { %s1739_s26 = scalar_lea.vmem %s452_s8, 16  ;;  %p1744_p12 = scmp.lt.s32.totalorder %s452_s8, %s2375_s13 }
 0x1c8   : > { %p1740_p9 = scmp.ne.s32.totalorder %s452_s8, %s1739_s26  ;;  %p1745_p0 = scmp.lt.s32.totalorder %s2411_s1, %s1739_s26 }
 0x1ca   : > { %p1746_p2 = por %p1745_p0, %p1744_p12 }
 0x1cc   : > { %p1747_p4 = pnand %p1746_p2, %p1740_p9 }
 0x1ce   : > { %1750 = shalt.err (!%p1747_p4)  }
 0x1cf   : > { %454 = dma.hbm_to_vmem [thread:$0]  %s442_s9, 16, %s452_s8, [#allocation4] }
 0x1d0   : > { %s1160_s14 = sshll.u32 %s2648_s0, 4  ;;  %s2219_s27 = smov [#allocation3 + $0x12]  }
 0x1d1   : > { %s481_s15 = sshll.u32 %s2219_s27, 4  ;;  %s457_s10 = scalar_lea.hbm %s2994_s4, %s1160_s14  ;;  %s2668_s15 = int_to_ptr.vmem [resolvable:$true] %s481_s15 }
 0x1d2   : > { %s1751_s12 = scalar_lea.hbm %s457_s10, 16  ;;  %p1754_p10 = scmp.lt.u32.totalorder %s457_s10, %s2994_s4 }
 0x1d3   : > { %p1752_p8 = scmp.ne.s32.totalorder %s457_s10, %s1751_s12  ;;  %p1755_p11 = scmp.lt.u32.totalorder %s2402_s2, %s1751_s12 }
 0x1d4   : > { %p1757_p1 = scmp.lt.u32.totalorder %s1751_s12, %s457_s10 }
 0x1d5   : > { %p1756_p13 = por %p1755_p11, %p1754_p10 }
 0x1d7   : > { %p1758_p3 = por %p1757_p1, %p1756_p13 }
 0x1d9   : > { %p1759_p5 = pnand %p1758_p3, %p1752_p8 }
 0x1db   : > { %1762 = shalt.err (!%p1759_p5)  }
 0x1dc   : > { %s1763_s8 = scalar_lea.vmem %s2653_s25, 16  ;;  %p1768_p7 = scmp.lt.s32.totalorder %s2653_s25, %s2375_s13 }
 0x1dd   : > { %p1764_p6 = scmp.ne.s32.totalorder %s2653_s25, %s1763_s8  ;;  %p1769_p9 = scmp.lt.s32.totalorder %s2411_s1, %s1763_s8 }
 0x1df   : > { %p1770_p12 = por %p1769_p9, %p1768_p7 }
 0x1e1   : > { %p1771_p0 = pnand %p1770_p12, %p1764_p6 }
 0x1e3   : > { %1774 = shalt.err (!%p1771_p0)  }
 0x1e4   : > { %469 = dma.hbm_to_vmem [thread:$0]  %s457_s10, 16, %s2653_s25, [#allocation4] }
 0x1e5   : > { %s1162_s0 = sshll.u32 %s2650_s17, 4  ;;  %s2681_s9 = sld [smem:[#allocation2 + $0x13]] }
 0x1e6   : > { %s472_s14 = scalar_lea.hbm %s2994_s4, %s1162_s0 }
 0x1e7   : > { %s1775_s27 = scalar_lea.hbm %s472_s14, 16  ;;  %p1778_p4 = scmp.lt.u32.totalorder %s472_s14, %s2994_s4 }
 0x1e8   : > { %p1776_p2 = scmp.ne.s32.totalorder %s472_s14, %s1775_s27  ;;  %p1779_p8 = scmp.lt.u32.totalorder %s2402_s2, %s1775_s27 }
 0x1e9   : > { %p1781_p11 = scmp.lt.u32.totalorder %s1775_s27, %s472_s14 }
 0x1ea   : > { %p1780_p10 = por %p1779_p8, %p1778_p4 }
 0x1ec   : > { %p1782_p13 = por %p1781_p11, %p1780_p10 }
 0x1ee   : > { %p1783_p1 = pnand %p1782_p13, %p1776_p2 }
 0x1f0   : > { %1786 = shalt.err (!%p1783_p1)  }
 0x1f1   : > { %s1787_s25 = scalar_lea.vmem %s2668_s15, 16  ;;  %p1792_p5 = scmp.lt.s32.totalorder %s2668_s15, %s2375_s13 }
 0x1f2   : > { %p1788_p3 = scmp.ne.s32.totalorder %s2668_s15, %s1787_s25  ;;  %p1793_p6 = scmp.lt.s32.totalorder %s2411_s1, %s1787_s25 }
 0x1f4   : > { %p1794_p7 = por %p1793_p6, %p1792_p5 }
 0x1f6   : > { %p1795_p9 = pnand %p1794_p7, %p1788_p3 }
 0x1f8   : > { %1798 = shalt.err (!%p1795_p9)  }
 0x1f9   : > { %484 = dma.hbm_to_vmem [thread:$0]  %s472_s14, 16, %s2668_s15, [#allocation4] }
 0x1fa   : > { %s2220_s17 = smov [#allocation3 + $0x13]   ;;  %s2696_s12 = sld [smem:[#allocation2 + $0x14]] }
 0x1fb   : > { %s496_s10 = sshll.u32 %s2220_s17, 4  ;;  %s2221_s24 = smov [#allocation3 + $0x14]   ;;  %s497_s10 = int_to_ptr.vmem [resolvable:$true] %s496_s10 }
 0x1fc   : > { %s511_s16 = sshll.u32 %s2221_s24, 4  ;;  %s2698_s8 = sld [smem:[#allocation2 + $0x15]]  ;;  %s2701_s16 = int_to_ptr.vmem [resolvable:$true] %s511_s16 }
 0x1fd   : > { %s1164_s0 = sshll.u32 %s2681_s9, 4 }
 0x1fe   : > { %s487_s27 = scalar_lea.hbm %s2994_s4, %s1164_s0 }
 0x1ff   : > { %s1799_s3 = scalar_lea.hbm %s487_s27, 16  ;;  %p1802_p0 = scmp.lt.u32.totalorder %s487_s27, %s2994_s4 }
 0x200   : > { %p1800_p12 = scmp.ne.s32.totalorder %s487_s27, %s1799_s3  ;;  %p1803_p2 = scmp.lt.u32.totalorder %s2402_s2, %s1799_s3 }
 0x201   : > { %p1805_p8 = scmp.lt.u32.totalorder %s1799_s3, %s487_s27 }
 0x202   : > { %p1804_p4 = por %p1803_p2, %p1802_p0 }
 0x204   : > { %p1806_p10 = por %p1805_p8, %p1804_p4 }
 0x206   : > { %p1807_p11 = pnand %p1806_p10, %p1800_p12 }
 0x208   : > { %1810 = shalt.err (!%p1807_p11)  }
 0x209   : > { %s1811_s14 = scalar_lea.vmem %s497_s10, 16  ;;  %p1816_p1 = scmp.lt.s32.totalorder %s497_s10, %s2375_s13 }
 0x20a   : > { %p1812_p13 = scmp.ne.s32.totalorder %s497_s10, %s1811_s14  ;;  %p1817_p3 = scmp.lt.s32.totalorder %s2411_s1, %s1811_s14 }
 0x20c   : > { %p1818_p5 = por %p1817_p3, %p1816_p1 }
 0x20e   : > { %p1819_p6 = pnand %p1818_p5, %p1812_p13 }
 0x210   : > { %1822 = shalt.err (!%p1819_p6)  }
 0x211   : > { %499 = dma.hbm_to_vmem [thread:$0]  %s487_s27, 16, %s497_s10, [#allocation4] }
 0x212   : > { %s1166_s9 = sshll.u32 %s2696_s12, 4  ;;  %s2222_s25 = smov [#allocation3 + $0x15]  }
 0x213   : > { %s526_s17 = sshll.u32 %s2222_s25, 4  ;;  %s502_s29 = scalar_lea.hbm %s2994_s4, %s1166_s9  ;;  %s2716_s17 = int_to_ptr.vmem [resolvable:$true] %s526_s17 }
 0x214   : > { %s1823_s26 = scalar_lea.hbm %s502_s29, 16  ;;  %p1826_p9 = scmp.lt.u32.totalorder %s502_s29, %s2994_s4 }
 0x215   : > { %p1824_p7 = scmp.ne.s32.totalorder %s502_s29, %s1823_s26  ;;  %p1827_p12 = scmp.lt.u32.totalorder %s2402_s2, %s1823_s26 }
 0x216   : > { %p1829_p2 = scmp.lt.u32.totalorder %s1823_s26, %s502_s29 }
 0x217   : > { %p1828_p0 = por %p1827_p12, %p1826_p9 }
 0x219   : > { %p1830_p4 = por %p1829_p2, %p1828_p0 }
 0x21b   : > { %p1831_p8 = pnand %p1830_p4, %p1824_p7 }
 0x21d   : > { %1834 = shalt.err (!%p1831_p8)  }
 0x21e   : > { %s1835_s10 = scalar_lea.vmem %s2701_s16, 16  ;;  %p1840_p11 = scmp.lt.s32.totalorder %s2701_s16, %s2375_s13 }
 0x21f   : > { %p1836_p10 = scmp.ne.s32.totalorder %s2701_s16, %s1835_s10  ;;  %p1841_p13 = scmp.lt.s32.totalorder %s2411_s1, %s1835_s10 }
 0x221   : > { %p1842_p1 = por %p1841_p13, %p1840_p11 }
 0x223   : > { %p1843_p3 = pnand %p1842_p1, %p1836_p10 }
 0x225   : > { %1846 = shalt.err (!%p1843_p3)  }
 0x226   : > { %514 = dma.hbm_to_vmem [thread:$0]  %s502_s29, 16, %s2701_s16, [#allocation4] }
 0x227   : > { %s1168_s12 = sshll.u32 %s2698_s8, 4  ;;  %s2729_s27 = sld [smem:[#allocation2 + $0x16]] }
 0x228   : > { %s517_s9 = scalar_lea.hbm %s2994_s4, %s1168_s12 }
 0x229   : > { %s1847_s25 = scalar_lea.hbm %s517_s9, 16  ;;  %p1850_p6 = scmp.lt.u32.totalorder %s517_s9, %s2994_s4 }
 0x22a   : > { %p1848_p5 = scmp.ne.s32.totalorder %s517_s9, %s1847_s25  ;;  %p1851_p7 = scmp.lt.u32.totalorder %s2402_s2, %s1847_s25 }
 0x22b   : > { %p1853_p12 = scmp.lt.u32.totalorder %s1847_s25, %s517_s9 }
 0x22c   : > { %p1852_p9 = por %p1851_p7, %p1850_p6 }
 0x22e   : > { %p1854_p0 = por %p1853_p12, %p1852_p9 }
 0x230   : > { %p1855_p2 = pnand %p1854_p0, %p1848_p5 }
 0x232   : > { %1858 = shalt.err (!%p1855_p2)  }
 0x233   : > { %s1859_s16 = scalar_lea.vmem %s2716_s17, 16  ;;  %p1864_p8 = scmp.lt.s32.totalorder %s2716_s17, %s2375_s13 }
 0x234   : > { %p1860_p4 = scmp.ne.s32.totalorder %s2716_s17, %s1859_s16  ;;  %p1865_p10 = scmp.lt.s32.totalorder %s2411_s1, %s1859_s16 }
 0x236   : > { %p1866_p11 = por %p1865_p10, %p1864_p8 }
 0x238   : > { %p1867_p13 = pnand %p1866_p11, %p1860_p4 }
 0x23a   : > { %1870 = shalt.err (!%p1867_p13)  }
 0x23b   : > { %529 = dma.hbm_to_vmem [thread:$0]  %s517_s9, 16, %s2716_s17, [#allocation4] }
 0x23c   : > { %s2223_s8 = smov [#allocation3 + $0x16]   ;;  %s2744_s26 = sld [smem:[#allocation2 + $0x17]] }
 0x23d   : > { %s541_s29 = sshll.u32 %s2223_s8, 4  ;;  %s2224_s3 = smov [#allocation3 + $0x17]   ;;  %s542_s29 = int_to_ptr.vmem [resolvable:$true] %s541_s29 }
 0x23e   : > { %s556_s7 = sshll.u32 %s2224_s3, 4  ;;  %s2746_s10 = sld [smem:[#allocation2 + $0x18]]  ;;  %s2749_s7 = int_to_ptr.vmem [resolvable:$true] %s556_s7 }
 0x23f   : > { %s1170_s12 = sshll.u32 %s2729_s27, 4 }
 0x240   : > { %s532_s25 = scalar_lea.hbm %s2994_s4, %s1170_s12 }
 0x241   : > { %s1871_s24 = scalar_lea.hbm %s532_s25, 16  ;;  %p1874_p3 = scmp.lt.u32.totalorder %s532_s25, %s2994_s4 }
 0x242   : > { %p1872_p1 = scmp.ne.s32.totalorder %s532_s25, %s1871_s24  ;;  %p1875_p5 = scmp.lt.u32.totalorder %s2402_s2, %s1871_s24 }
 0x243   : > { %p1877_p7 = scmp.lt.u32.totalorder %s1871_s24, %s532_s25 }
 0x244   : > { %p1876_p6 = por %p1875_p5, %p1874_p3 }
 0x246   : > { %p1878_p9 = por %p1877_p7, %p1876_p6 }
 0x248   : > { %p1879_p12 = pnand %p1878_p9, %p1872_p1 }
 0x24a   : > { %1882 = shalt.err (!%p1879_p12)  }
 0x24b   : > { %s1883_s9 = scalar_lea.vmem %s542_s29, 16  ;;  %p1888_p2 = scmp.lt.s32.totalorder %s542_s29, %s2375_s13 }
 0x24c   : > { %p1884_p0 = scmp.ne.s32.totalorder %s542_s29, %s1883_s9  ;;  %p1889_p4 = scmp.lt.s32.totalorder %s2411_s1, %s1883_s9 }
 0x24e   : > { %p1890_p8 = por %p1889_p4, %p1888_p2 }
 0x250   : > { %p1891_p10 = pnand %p1890_p8, %p1884_p0 }
 0x252   : > { %1894 = shalt.err (!%p1891_p10)  }
 0x253   : > { %544 = dma.hbm_to_vmem [thread:$0]  %s532_s25, 16, %s542_s29, [#allocation4] }
 0x254   : > { %s1172_s27 = sshll.u32 %s2744_s26, 4  ;;  %s2225_s16 = smov [#allocation3 + $0x18]  }
 0x255   : > { %s571_s8 = sshll.u32 %s2225_s16, 4  ;;  %s547_s15 = scalar_lea.hbm %s2994_s4, %s1172_s27  ;;  %s2764_s8 = int_to_ptr.vmem [resolvable:$true] %s571_s8 }
 0x256   : > { %s1895_s14 = scalar_lea.hbm %s547_s15, 16  ;;  %p1898_p13 = scmp.lt.u32.totalorder %s547_s15, %s2994_s4 }
 0x257   : > { %p1896_p11 = scmp.ne.s32.totalorder %s547_s15, %s1895_s14  ;;  %p1899_p1 = scmp.lt.u32.totalorder %s2402_s2, %s1895_s14 }
 0x258   : > { %p1901_p5 = scmp.lt.u32.totalorder %s1895_s14, %s547_s15 }
 0x259   : > { %p1900_p3 = por %p1899_p1, %p1898_p13 }
 0x25b   : > { %p1902_p6 = por %p1901_p5, %p1900_p3 }
 0x25d   : > { %p1903_p7 = pnand %p1902_p6, %p1896_p11 }
 0x25f   : > { %1906 = shalt.err (!%p1903_p7)  }
 0x260   : > { %s1907_s29 = scalar_lea.vmem %s2749_s7, 16  ;;  %p1912_p12 = scmp.lt.s32.totalorder %s2749_s7, %s2375_s13 }
 0x261   : > { %p1908_p9 = scmp.ne.s32.totalorder %s2749_s7, %s1907_s29  ;;  %p1913_p0 = scmp.lt.s32.totalorder %s2411_s1, %s1907_s29 }
 0x263   : > { %p1914_p2 = por %p1913_p0, %p1912_p12 }
 0x265   : > { %p1915_p4 = pnand %p1914_p2, %p1908_p9 }
 0x267   : > { %1918 = shalt.err (!%p1915_p4)  }
 0x268   : > { %559 = dma.hbm_to_vmem [thread:$0]  %s547_s15, 16, %s2749_s7, [#allocation4] }
 0x269   : > { %s1174_s26 = sshll.u32 %s2746_s10, 4  ;;  %s2777_s25 = sld [smem:[#allocation2 + $0x19]] }
 0x26a   : > { %s562_s27 = scalar_lea.hbm %s2994_s4, %s1174_s26 }
 0x26b   : > { %s1919_s16 = scalar_lea.hbm %s562_s27, 16  ;;  %p1922_p10 = scmp.lt.u32.totalorder %s562_s27, %s2994_s4 }
 0x26c   : > { %p1920_p8 = scmp.ne.s32.totalorder %s562_s27, %s1919_s16  ;;  %p1923_p11 = scmp.lt.u32.totalorder %s2402_s2, %s1919_s16 }
 0x26d   : > { %p1925_p1 = scmp.lt.u32.totalorder %s1919_s16, %s562_s27 }
 0x26e   : > { %p1924_p13 = por %p1923_p11, %p1922_p10 }
 0x270   : > { %p1926_p3 = por %p1925_p1, %p1924_p13 }
 0x272   : > { %p1927_p5 = pnand %p1926_p3, %p1920_p8 }
 0x274   : > { %1930 = shalt.err (!%p1927_p5)  }
 0x275   : > { %s1931_s7 = scalar_lea.vmem %s2764_s8, 16  ;;  %p1936_p7 = scmp.lt.s32.totalorder %s2764_s8, %s2375_s13 }
 0x276   : > { %p1932_p6 = scmp.ne.s32.totalorder %s2764_s8, %s1931_s7  ;;  %p1937_p9 = scmp.lt.s32.totalorder %s2411_s1, %s1931_s7 }
 0x278   : > { %p1938_p12 = por %p1937_p9, %p1936_p7 }
 0x27a   : > { %p1939_p0 = pnand %p1938_p12, %p1932_p6 }
 0x27c   : > { %1942 = shalt.err (!%p1939_p0)  }
 0x27d   : > { %574 = dma.hbm_to_vmem [thread:$0]  %s562_s27, 16, %s2764_s8, [#allocation4] }
 0x27e   : > { %s2226_s10 = smov [#allocation3 + $0x19]   ;;  %s2792_s14 = sld [smem:[#allocation2 + $0x1a]] }
 0x27f   : > { %s586_s15 = sshll.u32 %s2226_s10, 4  ;;  %s2227_s24 = smov [#allocation3 + $0x1a]   ;;  %s587_s15 = int_to_ptr.vmem [resolvable:$true] %s586_s15 }
 0x280   : > { %s601_s0 = sshll.u32 %s2227_s24, 4  ;;  %s2794_s29 = sld [smem:[#allocation2 + $0x1b]]  ;;  %s2797_s0 = int_to_ptr.vmem [resolvable:$true] %s601_s0 }
 0x281   : > { %s1176_s26 = sshll.u32 %s2777_s25, 4 }
 0x282   : > { %s577_s16 = scalar_lea.hbm %s2994_s4, %s1176_s26 }
 0x283   : > { %s1943_s3 = scalar_lea.hbm %s577_s16, 16  ;;  %p1946_p4 = scmp.lt.u32.totalorder %s577_s16, %s2994_s4 }
 0x284   : > { %p1944_p2 = scmp.ne.s32.totalorder %s577_s16, %s1943_s3  ;;  %p1947_p8 = scmp.lt.u32.totalorder %s2402_s2, %s1943_s3 }
 0x285   : > { %p1949_p11 = scmp.lt.u32.totalorder %s1943_s3, %s577_s16 }
 0x286   : > { %p1948_p10 = por %p1947_p8, %p1946_p4 }
 0x288   : > { %p1950_p13 = por %p1949_p11, %p1948_p10 }
 0x28a   : > { %p1951_p1 = pnand %p1950_p13, %p1944_p2 }
 0x28c   : > { %1954 = shalt.err (!%p1951_p1)  }
 0x28d   : > { %s1955_s27 = scalar_lea.vmem %s587_s15, 16  ;;  %p1960_p5 = scmp.lt.s32.totalorder %s587_s15, %s2375_s13 }
 0x28e   : > { %p1956_p3 = scmp.ne.s32.totalorder %s587_s15, %s1955_s27  ;;  %p1961_p6 = scmp.lt.s32.totalorder %s2411_s1, %s1955_s27 }
 0x290   : > { %p1962_p7 = por %p1961_p6, %p1960_p5 }
 0x292   : > { %p1963_p9 = pnand %p1962_p7, %p1956_p3 }
 0x294   : > { %1966 = shalt.err (!%p1963_p9)  }
 0x295   : > { %589 = dma.hbm_to_vmem [thread:$0]  %s577_s16, 16, %s587_s15, [#allocation4] }
 0x296   : > { %s1178_s25 = sshll.u32 %s2792_s14, 4  ;;  %s2228_s7 = smov [#allocation3 + $0x1b]  }
 0x297   : > { %s616_s10 = sshll.u32 %s2228_s7, 4  ;;  %s592_s17 = scalar_lea.hbm %s2994_s4, %s1178_s25  ;;  %s2812_s10 = int_to_ptr.vmem [resolvable:$true] %s616_s10 }
 0x298   : > { %s1967_s9 = scalar_lea.hbm %s592_s17, 16  ;;  %p1970_p0 = scmp.lt.u32.totalorder %s592_s17, %s2994_s4 }
 0x299   : > { %p1968_p12 = scmp.ne.s32.totalorder %s592_s17, %s1967_s9  ;;  %p1971_p2 = scmp.lt.u32.totalorder %s2402_s2, %s1967_s9 }
 0x29a   : > { %p1973_p8 = scmp.lt.u32.totalorder %s1967_s9, %s592_s17 }
 0x29b   : > { %p1972_p4 = por %p1971_p2, %p1970_p0 }
 0x29d   : > { %p1974_p10 = por %p1973_p8, %p1972_p4 }
 0x29f   : > { %p1975_p11 = pnand %p1974_p10, %p1968_p12 }
 0x2a1   : > { %1978 = shalt.err (!%p1975_p11)  }
 0x2a2   : > { %s1979_s15 = scalar_lea.vmem %s2797_s0, 16  ;;  %p1984_p1 = scmp.lt.s32.totalorder %s2797_s0, %s2375_s13 }
 0x2a3   : > { %p1980_p13 = scmp.ne.s32.totalorder %s2797_s0, %s1979_s15  ;;  %p1985_p3 = scmp.lt.s32.totalorder %s2411_s1, %s1979_s15 }
 0x2a5   : > { %p1986_p5 = por %p1985_p3, %p1984_p1 }
 0x2a7   : > { %p1987_p6 = pnand %p1986_p5, %p1980_p13 }
 0x2a9   : > { %1990 = shalt.err (!%p1987_p6)  }
 0x2aa   : > { %604 = dma.hbm_to_vmem [thread:$0]  %s592_s17, 16, %s2797_s0, [#allocation4] }
 0x2ab   : > { %s1180_s14 = sshll.u32 %s2794_s29, 4  ;;  %s2825_s16 = sld [smem:[#allocation2 + $0x1c]] }
 0x2ac   : > { %s607_s25 = scalar_lea.hbm %s2994_s4, %s1180_s14 }
 0x2ad   : > { %s1991_s7 = scalar_lea.hbm %s607_s25, 16  ;;  %p1994_p9 = scmp.lt.u32.totalorder %s607_s25, %s2994_s4 }
 0x2ae   : > { %p1992_p7 = scmp.ne.s32.totalorder %s607_s25, %s1991_s7  ;;  %p1995_p12 = scmp.lt.u32.totalorder %s2402_s2, %s1991_s7 }
 0x2af   : > { %p1997_p2 = scmp.lt.u32.totalorder %s1991_s7, %s607_s25 }
 0x2b0   : > { %p1996_p0 = por %p1995_p12, %p1994_p9 }
 0x2b2   : > { %p1998_p4 = por %p1997_p2, %p1996_p0 }
 0x2b4   : > { %p1999_p8 = pnand %p1998_p4, %p1992_p7 }
 0x2b6   : > { %2002 = shalt.err (!%p1999_p8)  }
 0x2b7   : > { %s2003_s0 = scalar_lea.vmem %s2812_s10, 16  ;;  %p2008_p11 = scmp.lt.s32.totalorder %s2812_s10, %s2375_s13 }
 0x2b8   : > { %p2004_p10 = scmp.ne.s32.totalorder %s2812_s10, %s2003_s0  ;;  %p2009_p13 = scmp.lt.s32.totalorder %s2411_s1, %s2003_s0 }
 0x2ba   : > { %p2010_p1 = por %p2009_p13, %p2008_p11 }
 0x2bc   : > { %p2011_p3 = pnand %p2010_p1, %p2004_p10 }
 0x2be   : > { %2014 = shalt.err (!%p2011_p3)  }
 0x2bf   : > { %619 = dma.hbm_to_vmem [thread:$0]  %s607_s25, 16, %s2812_s10, [#allocation4] }
 0x2c0   : > { %s2229_s29 = smov [#allocation3 + $0x1c]   ;;  %s2840_s9 = sld [smem:[#allocation2 + $0x1d]] }
 0x2c1   : > { %s631_s17 = sshll.u32 %s2229_s29, 4  ;;  %s2230_s3 = smov [#allocation3 + $0x1d]   ;;  %s632_s17 = int_to_ptr.vmem [resolvable:$true] %s631_s17 }
 0x2c2   : > { %s646_s12 = sshll.u32 %s2230_s3, 4  ;;  %s2842_s15 = sld [smem:[#allocation2 + $0x1e]]  ;;  %s2845_s12 = int_to_ptr.vmem [resolvable:$true] %s646_s12 }
 0x2c3   : > { %s1182_s14 = sshll.u32 %s2825_s16, 4 }
 0x2c4   : > { %s622_s7 = scalar_lea.hbm %s2994_s4, %s1182_s14 }
 0x2c5   : > { %s2015_s24 = scalar_lea.hbm %s622_s7, 16  ;;  %p2018_p6 = scmp.lt.u32.totalorder %s622_s7, %s2994_s4 }
 0x2c6   : > { %p2016_p5 = scmp.ne.s32.totalorder %s622_s7, %s2015_s24  ;;  %p2019_p7 = scmp.lt.u32.totalorder %s2402_s2, %s2015_s24 }
 0x2c7   : > { %p2021_p12 = scmp.lt.u32.totalorder %s2015_s24, %s622_s7 }
 0x2c8   : > { %p2020_p9 = por %p2019_p7, %p2018_p6 }
 0x2ca   : > { %p2022_p0 = por %p2021_p12, %p2020_p9 }
 0x2cc   : > { %p2023_p2 = pnand %p2022_p0, %p2016_p5 }
 0x2ce   : > { %2026 = shalt.err (!%p2023_p2)  }
 0x2cf   : > { %s2027_s25 = scalar_lea.vmem %s632_s17, 16  ;;  %p2032_p8 = scmp.lt.s32.totalorder %s632_s17, %s2375_s13 }
 0x2d0   : > { %p2028_p4 = scmp.ne.s32.totalorder %s632_s17, %s2027_s25  ;;  %p2033_p10 = scmp.lt.s32.totalorder %s2411_s1, %s2027_s25 }
 0x2d2   : > { %p2034_p11 = por %p2033_p10, %p2032_p8 }
 0x2d4   : > { %p2035_p13 = pnand %p2034_p11, %p2028_p4 }
 0x2d6   : > { %2038 = shalt.err (!%p2035_p13)  }
 0x2d7   : > { %634 = dma.hbm_to_vmem [thread:$0]  %s622_s7, 16, %s632_s17, [#allocation4] }
 0x2d8   : > { %s1184_s16 = sshll.u32 %s2840_s9, 4  ;;  %s2231_s0 = smov [#allocation3 + $0x1e]  }
 0x2d9   : > { %s661_s29 = sshll.u32 %s2231_s0, 4  ;;  %s637_s8 = scalar_lea.hbm %s2994_s4, %s1184_s16  ;;  %s2860_s29 = int_to_ptr.vmem [resolvable:$true] %s661_s29 }
 0x2da   : > { %s2039_s27 = scalar_lea.hbm %s637_s8, 16  ;;  %p2042_p3 = scmp.lt.u32.totalorder %s637_s8, %s2994_s4 }
 0x2db   : > { %p2040_p1 = scmp.ne.s32.totalorder %s637_s8, %s2039_s27  ;;  %p2043_p5 = scmp.lt.u32.totalorder %s2402_s2, %s2039_s27 }
 0x2dc   : > { %p2045_p7 = scmp.lt.u32.totalorder %s2039_s27, %s637_s8 }
 0x2dd   : > { %p2044_p6 = por %p2043_p5, %p2042_p3 }
 0x2df   : > { %p2046_p9 = por %p2045_p7, %p2044_p6 }
 0x2e1   : > { %p2047_p12 = pnand %p2046_p9, %p2040_p1 }
 0x2e3   : > { %2050 = shalt.err (!%p2047_p12)  }
 0x2e4   : > { %s2051_s17 = scalar_lea.vmem %s2845_s12, 16  ;;  %p2056_p2 = scmp.lt.s32.totalorder %s2845_s12, %s2375_s13 }
 0x2e5   : > { %p2052_p0 = scmp.ne.s32.totalorder %s2845_s12, %s2051_s17  ;;  %p2057_p4 = scmp.lt.s32.totalorder %s2411_s1, %s2051_s17 }
 0x2e7   : > { %p2058_p8 = por %p2057_p4, %p2056_p2 }
 0x2e9   : > { %p2059_p10 = pnand %p2058_p8, %p2052_p0 }
 0x2eb   : > { %2062 = shalt.err (!%p2059_p10)  }
 0x2ec   : > { %649 = dma.hbm_to_vmem [thread:$0]  %s637_s8, 16, %s2845_s12, [#allocation4] }
 0x2ed   : > { %s1186_s9 = sshll.u32 %s2842_s15, 4  ;;  %s1187_s7 = sld [smem:[#allocation2 + $0x1f]] }
 0x2ee   : > { %s652_s16 = scalar_lea.hbm %s2994_s4, %s1186_s9 }
 0x2ef   : > { %s2063_s0 = scalar_lea.hbm %s652_s16, 16  ;;  %p2066_p13 = scmp.lt.u32.totalorder %s652_s16, %s2994_s4 }
 0x2f0   : > { %p2064_p11 = scmp.ne.s32.totalorder %s652_s16, %s2063_s0  ;;  %p2067_p1 = scmp.lt.u32.totalorder %s2402_s2, %s2063_s0 }
 0x2f1   : > { %p2069_p5 = scmp.lt.u32.totalorder %s2063_s0, %s652_s16 }
 0x2f2   : > { %p2068_p3 = por %p2067_p1, %p2066_p13 }
 0x2f4   : > { %p2070_p6 = por %p2069_p5, %p2068_p3 }
 0x2f6   : > { %p2071_p7 = pnand %p2070_p6, %p2064_p11 }
 0x2f8   : > { %2074 = shalt.err (!%p2071_p7)  }
 0x2f9   : > { %s2075_s12 = scalar_lea.vmem %s2860_s29, 16  ;;  %p2080_p12 = scmp.lt.s32.totalorder %s2860_s29, %s2375_s13 }
 0x2fa   : > { %p2076_p9 = scmp.ne.s32.totalorder %s2860_s29, %s2075_s12  ;;  %p2081_p0 = scmp.lt.s32.totalorder %s2411_s1, %s2075_s12 }
 0x2fc   : > { %p2082_p2 = por %p2081_p0, %p2080_p12 }
 0x2fe   : > { %p2083_p4 = pnand %p2082_p2, %p2076_p9 }
 0x300   : > { %2086 = shalt.err (!%p2083_p4)  }
 0x301   : > { %664 = dma.hbm_to_vmem [thread:$0]  %s652_s16, 16, %s2860_s29, [#allocation4] }
 0x302   : > { %s2232_s15 = smov [#allocation3 + $0x1f]   ;;  %s1188_s27 = sshll.u32 %s1187_s7, 4 }
 0x303   : > { %s676_s8 = sshll.u32 %s2232_s15, 4  ;;  %s667_s17 = scalar_lea.hbm %s2994_s4, %s1188_s27  ;;  %s677_s8 = int_to_ptr.vmem [resolvable:$true] %s676_s8 }
 0x304   : > { %s2087_s9 = scalar_lea.hbm %s667_s17, 16  ;;  %p2090_p10 = scmp.lt.u32.totalorder %s667_s17, %s2994_s4 }
 0x305   : > { %p2088_p8 = scmp.ne.s32.totalorder %s667_s17, %s2087_s9  ;;  %p2091_p11 = scmp.lt.u32.totalorder %s2402_s2, %s2087_s9 }
 0x306   : > { %p2093_p1 = scmp.lt.u32.totalorder %s2087_s9, %s667_s17 }
 0x307   : > { %p2092_p13 = por %p2091_p11, %p2090_p10 }
 0x309   : > { %p2094_p3 = por %p2093_p1, %p2092_p13 }
 0x30b   : > { %p2095_p5 = pnand %p2094_p3, %p2088_p8 }
 0x30d   : > { %2098 = shalt.err (!%p2095_p5)  }
 0x30e   : > { %s2099_s29 = scalar_lea.vmem %s677_s8, 16  ;;  %p2104_p7 = scmp.lt.s32.totalorder %s677_s8, %s2375_s13 }
 0x30f   : > { %p2100_p6 = scmp.ne.s32.totalorder %s677_s8, %s2099_s29  ;;  %p2105_p9 = scmp.lt.s32.totalorder %s2411_s1, %s2099_s29 }
 0x311   : > { %p2106_p12 = por %p2105_p9, %p2104_p7 }
 0x313   : > { %p2107_p0 = pnand %p2106_p12, %p2100_p6 }
 0x315   : > { %2110 = shalt.err (!%p2107_p0)  }
 0x316   : > { %679 = dma.hbm_to_vmem [thread:$0]  %s667_s17, 16, %s677_s8, [#allocation4] }
 0x317   : > { %2169 = dma.done.wait [#allocation4], 512 }
 0x318   : > { %2170 = vsyncadd [#allocation4], 4294966784  ;;  %vm701_vm0 = vcmask 1043456   ;;  %v685_v2 = vld [vmem:[#allocation3] sm:$0xff]  ;;  %v686_v3 = vld [vmem:[#allocation3 + $0x8] sm:$0xff]  ;;  %vm792_vm1 = vcmask 1041409  }
 0x319   : > { %v687_v4 = vld [vmem:[#allocation3 + $0x10] sm:$0xff]  ;;  %v688_v5 = vld [vmem:[#allocation3 + $0x18] sm:$0xff]  ;;  %v693_v6 = vcombine.high %v685_v2, %v685_v2  ;;  %v694_v7 = vcombine.high %v686_v3, %v686_v3  ;;  %v702_v9 = vsel %vm701_vm0, %v685_v2, 0.0  ;;  %v716_v12 = vsel %vm701_vm0, %v686_v3, 0.0  ;;  %v758_v50 = vld [vmem:[#allocation5] sm:$0xff]  ;;  %s1192_s2 = sshll.u32 %s2189_s21, 7 }
 0x31a   : > { %v695_v8 = vcombine.high %v687_v4, %v687_v4  ;;  %v696_v10 = vcombine.high %v688_v5, %v688_v5  ;;  %v703_v11 = vrot.slane %v702_v9, 4  ;;  %v730_v13 = vsel %vm701_vm0, %v687_v4, 0.0  ;;  %s3018_s13 = scalar_lea.vmem [#allocation8], %s2361_s11  ;;  %s2938_s0 = scalar_lea.hbm %s2995_s5, %s1192_s2 }
 0x31b   : > { %v709_v14 = vsel %vm701_vm0, %v693_v6, 0.0  ;;  %v717_v15 = vrot.slane %v716_v12, 4  ;;  %v723_v16 = vsel %vm701_vm0, %v694_v7, 0.0  ;;  %v731_v17 = vrot.slane %v730_v13, 4  ;;  %s961_s1 = sshll.u32 %s3018_s13, 4  ;;  %s3019_s21 = smov %s3018_s13  ;;  %s2940_s1 = int_to_ptr.vmem [resolvable:$true] %s961_s1 }
 0x31c   : > { %v704_v18 = vadd.f32 %v703_v11, %v702_v9  ;;  %v710_v19 = vrot.slane %v709_v14, 4  ;;  %v724_v20 = vrot.slane %v723_v16, 4  ;;  %v737_v21 = vsel %vm701_vm0, %v695_v8, 0.0  ;;  %s3020_s3 = sand.u32 1, %s2181_s19   ;;  %s2111_s12 = scalar_lea.vmem %s2940_s1, 128 }
 0x31d   : > { %v718_v22 = vadd.f32 %v717_v15, %v716_v12  ;;  %v732_v23 = vadd.f32 %v731_v17, %v730_v13  ;;  %v738_v24 = vrot.slane %v737_v21, 4  ;;  %v744_v25 = vsel %vm701_vm0, %v688_v5, 0.0  ;;  %s947_s14 = scalar_lea.sflag [#allocation7], %s3020_s3  ;;  %p2112_p2 = scmp.ne.s32.totalorder %s2940_s1, %s2111_s12 }
 0x31e   : > { %v705_v26 = vrot.slane %v704_v18, 2  ;;  %v711_v27 = vadd.f32 %v710_v19, %v709_v14  ;;  %v725_v28 = vadd.f32 %v724_v20, %v723_v16  ;;  %v745_v29 = vrot.slane %v744_v25, 4  ;;  %p3021_p4 = scmp.ne.s32.totalorder %s3007_s28, 0  ;;  %s2233_s15 = smov [#allocation8]  }
 0x31f   : > { %v719_v30 = vrot.slane %v718_v22, 2  ;;  %v733_v31 = vrot.slane %v732_v23, 2  ;;  %v739_v32 = vadd.f32 %v738_v24, %v737_v21  ;;  %v751_v33 = vsel %vm701_vm0, %v696_v10, 0.0  ;;  %s2115_s8 = sshll.u32 %s2233_s15, 4  ;;  %s2116_s8 = int_to_ptr.vmem [resolvable:$false] %s2115_s8 }
 0x320   : > { %v706_v34 = vadd.f32 %v705_v26, %v704_v18  ;;  %v712_v35 = vrot.slane %v711_v27, 2  ;;  %v726_v36 = vrot.slane %v725_v28, 2  ;;  %v746_v37 = vadd.f32 %v745_v29, %v744_v25  ;;  %p2113_p8 = pnand %p2112_p2, %p3021_p4  ;;  %s2117_s27 = scalar_lea.vmem %s2116_s8, 256 }
 0x321   : > { %v720_v38 = vadd.f32 %v719_v30, %v718_v22  ;;  %v734_v39 = vadd.f32 %v733_v31, %v732_v23  ;;  %v740_v40 = vrot.slane %v739_v32, 2  ;;  %v752_v41 = vrot.slane %v751_v33, 4  ;;  %p2118_p11 = scmp.lt.s32.totalorder %s2940_s1, %s2116_s8  ;;  %p2119_p13 = scmp.lt.s32.totalorder %s2117_s27, %s2111_s12 }
 0x322   : > { %v707_v42 = vrot.slane %v706_v34, 1  ;;  %v713_v43 = vadd.f32 %v712_v35, %v711_v27  ;;  %v727_v44 = vadd.f32 %v726_v36, %v725_v28  ;;  %v747_v45 = vrot.slane %v746_v37, 2  ;;  %p2114_p10 = pneg %p2113_p8 }
 0x323   : > { %v721_v46 = vrot.slane %v720_v38, 1  ;;  %v735_v47 = vrot.slane %v734_v39, 1  ;;  %v741_v48 = vadd.f32 %v740_v40, %v739_v32  ;;  %v753_v49 = vadd.f32 %v752_v41, %v751_v33  ;;  %p2120_p1 = por %p2119_p13, %p2118_p11 }
 0x324   : > { %v708_v51 = vadd.f32 %v707_v42, %v706_v34  ;;  %v714_v52 = vrot.slane %v713_v43, 1  ;;  %v728_v53 = vrot.slane %v727_v44, 1  ;;  %v748_v54 = vadd.f32 %v747_v45, %v746_v37 }
 0x325   : > { %v722_v55 = vadd.f32 %v721_v46, %v720_v38  ;;  %v736_v56 = vadd.f32 %v735_v47, %v734_v39  ;;  %v742_v57 = vrot.slane %v741_v48, 1  ;;  %v754_v58 = vrot.slane %v753_v49, 2  ;;  %p2121_p3 = pnand %p2120_p1, %p2114_p10 }
 0x326   : > { %v715_v59 = vadd.f32 %v714_v52, %v713_v43  ;;  %v729_v60 = vadd.f32 %v728_v53, %v727_v44  ;;  %v749_v61 = vrot.slane %v748_v54, 1  ;;  %v760_v62 = vrot.slane %v758_v50, 1 }
 0x327   : > { %v743_v63 = vadd.f32 %v742_v57, %v741_v48  ;;  %v755_v2 = vadd.f32 %v754_v58, %v753_v49  ;;  %v761_v3 = vrot.slane %v758_v50, 2  ;;  %v762_v4 = vrot.slane %v758_v50, 3 }
 0x328   : > { %v750_v5 = vadd.f32 %v749_v61, %v748_v54  ;;  %v763_v6 = vrot.slane %v758_v50, 4  ;;  %v764_v7 = vrot.slane %v758_v50, 5  ;;  %v765_v8 = vrot.slane %v758_v50, 6 }
 0x329   : > { %v756_v9 = vrot.slane %v755_v2, 1  ;;  %v766_v10 = vrot.slane %v758_v50, 7  ;;  %v775_v11 = vadd.f32 %v758_v50, %v708_v51  ;;  %v776_v12 = vadd.f32 %v760_v62, %v715_v59 }
 0x32a   : > { %v777_v13 = vadd.f32 %v761_v3, %v722_v55  ;;  %v778_v14 = vadd.f32 %v762_v4, %v729_v60  ;;  %v779_v15 = vadd.f32 %v763_v6, %v736_v56  ;;  %v780_v16 = vadd.f32 %v764_v7, %v743_v63 }
 0x32b   : > { %v757_v17 = vadd.f32 %v756_v9, %v755_v2  ;;  %v781_v18 = vadd.f32 %v765_v8, %v750_v5  ;;  %v791_v19 = vrot.slane %v776_v12, 7  ;;  %vm795_vm2 = vcmask 1042434  }
 0x32c   : > { %v794_v20 = vrot.slane %v777_v13, 6  ;;  %v797_v21 = vrot.slane %v778_v14, 5  ;;  %vm798_vm3 = vcmask 1043459   ;;  %v800_v22 = vrot.slane %v779_v15, 4 }
 0x32d   : > { %v782_v23 = vadd.f32 %v766_v10, %v757_v17  ;;  %v793_v24 = vsel %vm792_vm1, %v791_v19, %v775_v11  ;;  %vm801_vm4 = vcmask 1044484   ;;  %v803_v25 = vrot.slane %v780_v16, 3 }
 0x32e   : > { %v796_v26 = vsel %vm795_vm2, %v794_v20, %v793_v24  ;;  %vm804_vm5 = vcmask 1045509   ;;  %v806_v27 = vrot.slane %v781_v18, 2  ;;  %vm807_vm6 = vcmask 1046534  }
 0x32f   : > { %v799_v28 = vsel %vm798_vm3, %v797_v21, %v796_v26  ;;  %v809_v29 = vrot.slane %v782_v23, 1  ;;  %vm810_vm7 = vcmask 1047559  }
 0x330   : > { %v802_v30 = vsel %vm801_vm4, %v800_v22, %v799_v28 }
 0x331   : > { %v805_v31 = vsel %vm804_vm5, %v803_v25, %v802_v30 }
 0x332   : > { %v808_v32 = vsel %vm807_vm6, %v806_v27, %v805_v31 }
 0x333   : > { %v811_v33 = vsel %vm810_vm7, %v809_v29, %v808_v32 }
 0x334   : > { %813 = vadd.xlane.f32.xlu0 %v811_v33 }
 0x3c1   : > { %v814_v34 = vpop.xlane.xlu0 %813 }
 0x3c2   : > { %v816_v35 = vmul.f32 0.0078125, %v814_v34 }
 0x3c4   : > { %v818_v36 = vrot.slane %v816_v35, 1  ;;  %v819_v37 = vrot.slane %v816_v35, 2  ;;  %v820_v38 = vrot.slane %v816_v35, 3  ;;  %v821_v39 = vrot.slane %v816_v35, 4 }
 0x3c5   : > { %v822_v40 = vrot.slane %v816_v35, 5  ;;  %v823_v41 = vrot.slane %v816_v35, 6  ;;  %v824_v42 = vrot.slane %v816_v35, 7  ;;  %v833_v43 = vsub.f32 %v775_v11, %v816_v35 }
 0x3c6   : > { %v834_v44 = vsub.f32 %v776_v12, %v818_v36  ;;  %v835_v45 = vsub.f32 %v777_v13, %v819_v37  ;;  %v836_v46 = vsub.f32 %v778_v14, %v820_v38  ;;  %v837_v47 = vsub.f32 %v779_v15, %v821_v39 }
 0x3c7   : > { %v838_v48 = vsub.f32 %v780_v16, %v822_v40  ;;  %v839_v49 = vsub.f32 %v781_v18, %v823_v41  ;;  %v840_v50 = vsub.f32 %v782_v23, %v824_v42  ;;  %v841_v55 = vmul.f32 %v833_v43, %v833_v43 }
 0x3c8   : > { %v842_v51 = vmul.f32 %v834_v44, %v834_v44  ;;  %v843_v52 = vmul.f32 %v835_v45, %v835_v45  ;;  %v844_v53 = vmul.f32 %v836_v46, %v836_v46  ;;  %v845_v54 = vmul.f32 %v837_v47, %v837_v47 }
 0x3c9   : > { %v846_v56 = vmul.f32 %v838_v48, %v838_v48  ;;  %v847_v59 = vmul.f32 %v839_v49, %v839_v49  ;;  %v848_v60 = vmul.f32 %v840_v50, %v840_v50 }
 0x3ca   : > { %v857_v57 = vrot.slane %v842_v51, 7  ;;  %v859_v58 = vrot.slane %v843_v52, 6  ;;  %v861_v62 = vrot.slane %v844_v53, 5  ;;  %v863_v2 = vrot.slane %v845_v54, 4 }
 0x3cb   : > { %v865_v4 = vrot.slane %v846_v56, 3  ;;  %v867_v6 = vrot.slane %v847_v59, 2  ;;  %v869_v8 = vrot.slane %v848_v60, 1 }
 0x3cc   : > { %v858_v61 = vsel %vm792_vm1, %v857_v57, %v841_v55 }
 0x3cd   : > { %v860_v63 = vsel %vm795_vm2, %v859_v58, %v858_v61 }
 0x3ce   : > { %v862_v3 = vsel %vm798_vm3, %v861_v62, %v860_v63 }
 0x3cf   : > { %v864_v5 = vsel %vm801_vm4, %v863_v2, %v862_v3 }
 0x3d0   : > { %v866_v7 = vsel %vm804_vm5, %v865_v4, %v864_v5 }
 0x3d1   : > { %v868_v9 = vsel %vm807_vm6, %v867_v6, %v866_v7 }
 0x3d2   : > { %v870_v10 = vsel %vm810_vm7, %v869_v8, %v868_v9 }
 0x3d3   : > { %872 = vadd.xlane.f32.xlu0 %v870_v10 }
 0x460   : > { %v873_v11 = vpop.xlane.xlu0 %872 }
 0x461   : > { %v874_v12 = vmul.f32 0.0078125, %v873_v11 }
 0x463   : > { %v875_v13 = vadd.f32 1e-12, %v874_v12 }
 0x465   : > { %1301 = vrsqrt.f32 %v875_v13 }
 0x46f   : > { %v1302_v14 = vpop.eup %1301 }
 0x470   : > { %v883_v15 = vmul.f32 %v1302_v14, %v2380_v0 }
 0x472   : > { %v885_v16 = vrot.slane %v883_v15, 1  ;;  %v886_v17 = vrot.slane %v883_v15, 2  ;;  %v887_v18 = vrot.slane %v883_v15, 3  ;;  %v888_v19 = vrot.slane %v883_v15, 4 }
 0x473   : > { %v889_v20 = vrot.slane %v883_v15, 5  ;;  %v890_v21 = vrot.slane %v883_v15, 6  ;;  %v891_v22 = vrot.slane %v883_v15, 7  ;;  %v900_v23 = vmul.f32 %v883_v15, %v833_v43 }
 0x474   : > { %v901_v24 = vmul.f32 %v885_v16, %v834_v44  ;;  %v902_v25 = vmul.f32 %v886_v17, %v835_v45  ;;  %v903_v26 = vmul.f32 %v887_v18, %v836_v46  ;;  %v904_v27 = vmul.f32 %v888_v19, %v837_v47 }
 0x475   : > { %v905_v28 = vmul.f32 %v889_v20, %v838_v48  ;;  %v906_v29 = vmul.f32 %v890_v21, %v839_v49  ;;  %v907_v30 = vmul.f32 %v891_v22, %v840_v50  ;;  %v914_v34 = vadd.f32 %v2385_v1, %v900_v23 }
 0x476   : > { %v915_v31 = vadd.f32 %v2385_v1, %v901_v24  ;;  %v916_v0 = vadd.f32 %v2385_v1, %v902_v25  ;;  %v917_v32 = vadd.f32 %v2385_v1, %v903_v26  ;;  %v918_v33 = vadd.f32 %v2385_v1, %v904_v27 }
 0x477   : > { %v919_v35 = vadd.f32 %v2385_v1, %v905_v28  ;;  %v920_v38 = vadd.f32 %v2385_v1, %v906_v29  ;;  %v921_v39 = vadd.f32 %v2385_v1, %v907_v30 }
 0x478   : > { %v930_v36 = vrot.slane %v915_v31, 7  ;;  %v932_v37 = vrot.slane %v916_v0, 6  ;;  %v934_v41 = vrot.slane %v917_v32, 5  ;;  %v936_v43 = vrot.slane %v918_v33, 4 }
 0x479   : > { %v938_v45 = vrot.slane %v919_v35, 3  ;;  %v940_v47 = vrot.slane %v920_v38, 2  ;;  %v942_v48 = vrot.slane %v921_v39, 1 }
 0x47a   : > { %v931_v40 = vsel %vm792_vm1, %v930_v36, %v914_v34 }
 0x47b   : > { %v933_v42 = vsel %vm795_vm2, %v932_v37, %v931_v40 }
 0x47c   : > { %v935_v44 = vsel %vm798_vm3, %v934_v41, %v933_v42 }
 0x47d   : > { %v937_v46 = vsel %vm801_vm4, %v936_v43, %v935_v44 }
 0x47e   : > { %v939_v1 = vsel %vm804_vm5, %v938_v45, %v937_v46 }
 0x47f   : > { %v941_v49 = vsel %vm807_vm6, %v940_v47, %v939_v1 }
 0x480   : > { %v943_v50 = vsel %vm810_vm7, %v942_v48, %v941_v49 }
 0x481   : > { %945 = vst [vmem:[%s3019_s21] sm:$0xff] %v943_v50 }
 0x482   : > { %2124 = shalt.err (!%p2121_p3)
}
 0x483   : > { %s2125_s11 = scalar_lea.hbm %s2938_s0, 128  ;;  %s2129_s17 = scalar_lea.hbm %s2995_s5, 256 }
 0x484   : > { %p2126_p5 = scmp.ne.s32.totalorder %s2938_s0, %s2125_s11  ;;  %p2130_p9 = scmp.lt.u32.totalorder %s2938_s0, %s2995_s5 }
 0x485   : > { %p2131_p12 = scmp.lt.u32.totalorder %s2129_s17, %s2125_s11  ;;  %p2133_p2 = scmp.lt.u32.totalorder %s2125_s11, %s2938_s0 }
 0x486   : > { %p2127_p6 = pnand %p2126_p5, %p3021_p4 }
 0x487   : > { %p2132_p0 = por %p2131_p12, %p2130_p9 }
 0x488   : > { %p2128_p7 = pneg %p2127_p6 }
 0x489   : > { %p2134_p8 = por %p2133_p2, %p2132_p0 }
 0x48b   : > { %p2135_p10 = pnand %p2134_p8, %p2128_p7 }
 0x48d   : > { %2138 = shalt.err (!%p2135_p10)
}
 0x48e   : > { %1202 = dma.vmem_to_hbm [thread:$0]  (%p3021_p4), %s2940_s1, 128, %s2938_s0, %s947_s14  }
 0x48f PF: > { %p1214_p11 = scmp.ge.s32.totalorder %s2197_s23, 2  ;;  %s973_s25 = sand.u32 1, %s2177_s18  }
 0x490   : > { %p3022_p13 = scmp.ne.s32.totalorder %s3008_s30, 0  ;;  %s974_s29 = scalar_lea.sflag [#allocation7], %s973_s25 }
 0x492   : > { %p1209_p1 = pnand %p1214_p11, %p3022_p13 }
 0x494   : > { %2172 = dma.done.wait (!%p1209_p1), %s974_s29, 128  }
 0x495   : > { %2174 = vsyncadd (!%p1209_p1), %s974_s29, 4294967168  ;;  %s19_s23 = sadd.s32 1, %s2197_s23   ;;  %s3023_s28 = sld [smem:[#allocation81_spill]] }
 0x496   : > { %p16_p3 = scmp.ge.s32.totalorder %s19_s23, 4   ;;  %s3024_s18 = smov %s2181_s19 }
 0x497   : > { %s3025_s19 = smov %s2185_s20  ;;  %s3026_s20 = smov %s2317_s6 }
 0x498   : > { %s3027_s21 = smov %s2193_s22  ;;  %18 = sbr.rel (!%p16_p3) target bundleno = 10 (0xa), region = 269 }
 0x49b   : > { %s3028_s22 = smov %s3023_s28 }
 0x49f   :  { %979 = vsyncpa [#allocation6], 1 }
 0x4a0   :  { %981 = vsyncpa [#allocation6 + $0x1], 1 }
 0x4a1   :  { %982 = vsyncpa [#allocation7], 1 }
 0x4a2   :  { %984 = vsyncpa [#allocation7 + $0x1], 1 }
 0x4a3   :  { %985 = vsyncmov [#allocation4] }
 0x4a6   :  { %s986_s30 = vpop.sfrf %985 }
 0x4a7   :  { %p1195_p4 = scmp.ne.s32.totalorder %s986_s30, 0 }
 0x4a9   :  { %990 = shalt.err (%p1195_p4)  }
 0x4aa   :  { %992 = vsyncmov [#allocation4 + $0x1] }
 0x4ad   :  { %s993_s2 = vpop.sfrf %992 }
 0x4ae   :  { %p1196_p5 = scmp.ne.s32.totalorder %s993_s2, 0 }
 0x4b0   :  { %997 = shalt.err (%p1196_p5)  }
 0x4b1   :  { %999 = vsyncmov [#allocation4 + $0x2] }
 0x4b4   :  { %s1000_s6 = vpop.sfrf %999 }
 0x4b5   :  { %p1197_p6 = scmp.ne.s32.totalorder %s1000_s6, 0 }
 0x4b7   :  { %1004 = shalt.err (%p1197_p6)  }

</bundles_post_ra>
